<compile_context>
chip_gen: v6e
topology: v6e:2x2x1
jax: 0.10.0
libtpu: 0.0.40
codegen_flags: <defaults>
</compile_context>

<pallas_src>
import jax
import jax.numpy as jnp
from jax.experimental import pallas as pl
from jax.experimental.pallas import tpu as pltpu


# ----------------------------------------------------------------------------
# Pallas kernel: fused 5-layer MLP (4x [Linear + folded BN + LeakyReLU], head).
# One grid step processes a (TILE_B, K) activation tile; all weights are
# whole-array blocks with constant index_maps, so they stay VMEM-resident
# across the batch grid axis (no per-tile weight re-DMA).
# ----------------------------------------------------------------------------
def _smirk_mlp_kernel(x_ref, w1_ref, w234_ref, w5_ref, bias_ref, o_ref):
    biases = bias_ref[...]                               # (8, H) f32

    def layer(h, w, row):
        # bf16 x bf16 MXU matmul, f32 accumulation; bias/LeakyReLU kept in f32
        # (portable to v5e, which has no bf16 VPU).
        y = jnp.dot(h.astype(jnp.bfloat16), w, preferred_element_type=jnp.float32)
        y = y + biases[row:row + 1, :]                   # folded Linear+BN bias
        return jnp.maximum(y, 0.2 * y)                   # LeakyReLU(0.2)

    h = x_ref[...]                                       # (TILE_B, K) bf16
    h = layer(h, w1_ref[...], 0)     # fc1 / bn1 / leaky_relu (+dropout1 = id)
    h = layer(h, w234_ref[0], 1)     # fc2 / bn2 / leaky_relu (+dropout2 = id)
    h = layer(h, w234_ref[1], 2)     # fc3 / bn3 / leaky_relu (+dropout3 = id)
    h = layer(h, w234_ref[2], 3)     # fc4 / bn4 / leaky_relu

    n_head = o_ref.shape[1]                              # 128 (lane-dense head)
    out = jnp.dot(h.astype(jnp.bfloat16), w5_ref[...],
                  preferred_element_type=jnp.float32) + biases[4:5, :n_head]
    o_ref[...] = out.astype(o_ref.dtype)


def smirk_recognition_forward(emoca_features, prepared, *, tile_b=128,
                              n_expression=7):
    """Fused MLP over a batch of frames.

    emoca_features: [B, input_size] float32 (all frames batched together).
    prepared: BN-folded bf16 weights (w1, w234, w5) + packed f32 'biases'.
    Returns the 7 "expression" logits, shape [B, 7].
    """
    B, K = emoca_features.shape
    K_pad = prepared["w1"].shape[0]          # input dim padded to lane width
    n_head = prepared["w5"].shape[1]         # 128 (lane-dense padded head)

    # Activations stream as bf16 (they are cast to bf16 for the MXU anyway).
    x = emoca_features.astype(jnp.bfloat16)
    if K_pad != K:
        x = jnp.pad(x, ((0, 0), (0, K_pad - K)))
    num_tiles = pl.cdiv(B, tile_b)
    b_pad = num_tiles * tile_b
    if b_pad != B:
        x = jnp.pad(x, ((0, b_pad - B), (0, 0)))

    const2 = lambda i: (0, 0)
    const3 = lambda i: (0, 0, 0)

    out = pl.pallas_call(
        _smirk_mlp_kernel,
        out_shape=jax.ShapeDtypeStruct((b_pad, n_head), jnp.float32),
        grid_spec=pltpu.PrefetchScalarGridSpec(
            num_scalar_prefetch=0,
            grid=(num_tiles,),
            in_specs=[
                pl.BlockSpec((tile_b, K_pad), lambda i: (i, 0)),   # activations
                pl.BlockSpec(prepared["w1"].shape, const2),        # VMEM-resident
                pl.BlockSpec(prepared["w234"].shape, const3),      # VMEM-resident
                pl.BlockSpec(prepared["w5"].shape, const2),        # VMEM-resident
                pl.BlockSpec(prepared["biases"].shape, const2),    # VMEM-resident
            ],
            out_specs=pl.BlockSpec((tile_b, n_head), lambda i: (i, 0)),
        ),
        compiler_params=pltpu.CompilerParams(
            # Batch tiles are independent -> shard across the 2 TCs on v7x.
            dimension_semantics=("parallel",)),
    )(x, prepared["w1"], prepared["w234"], prepared["w5"], prepared["biases"])

    return out[:B, :n_expression]


# ----------------------------------------------------------------------------
# Deterministic synthetic parameters + BN folding / packing (glue, plain JAX).
# ----------------------------------------------------------------------------
def make_raw_params(key, input_size, hidden_size, output_size):
    """Independent random Linear + BatchNorm(eval) parameters."""
    ks = iter(jax.random.split(key, 26))

    def linear(fan_in, fan_out):
        w = jax.random.normal(next(ks), (fan_in, fan_out), jnp.float32) / jnp.sqrt(fan_in)
        b = 0.01 * jax.random.normal(next(ks), (1, fan_out), jnp.float32)
        return w, b

    def bn(n):
        gamma = 1.0 + 0.1 * jax.random.normal(next(ks), (1, n), jnp.float32)
        beta = 0.1 * jax.random.normal(next(ks), (1, n), jnp.float32)
        mean = 0.1 * jax.random.normal(next(ks), (1, n), jnp.float32)
        var = jnp.abs(jax.random.normal(next(ks), (1, n), jnp.float32)) + 0.5
        return gamma, beta, mean, var

    raw = {}
    fan_in = input_size
    for i in (1, 2, 3, 4):
        raw[f"w{i}"], raw[f"b{i}"] = linear(fan_in, hidden_size)
        raw[f"g{i}"], raw[f"be{i}"], raw[f"m{i}"], raw[f"v{i}"] = bn(hidden_size)
        fan_in = hidden_size
    raw["w5"], raw["b5"] = linear(hidden_size, output_size)
    return raw


def prepare_params(raw, eps=1e-5, lane=128):
    """Fold BN into Linear, cast weights to bf16, pad lane-aligned, pack."""
    hidden = raw["w1"].shape[1]

    def fold(i):
        scale = raw[f"g{i}"] / jnp.sqrt(raw[f"v{i}"] + eps)      # (1, H)
        shift = raw[f"be{i}"] - raw[f"m{i}"] * scale
        w_f = (raw[f"w{i}"] * scale).astype(jnp.bfloat16)
        b_f = (raw[f"b{i}"] * scale + shift).astype(jnp.float32)
        return w_f, b_f

    w1, b1 = fold(1)
    w2, b2 = fold(2)
    w3, b3 = fold(3)
    w4, b4 = fold(4)

    # Pad w1's K from input_size to a lane multiple (zero rows -> exact).
    k = w1.shape[0]
    k_pad = max(lane, -(-k // lane) * lane)
    w1 = jnp.zeros((k_pad, hidden), jnp.bfloat16).at[:k].set(w1)

    # Lane-dense head: pad the 10 output columns to 128 (wrapper slices [:7]).
    out_dim = raw["w5"].shape[1]
    w5 = jnp.zeros((hidden, lane), jnp.float32).at[:, :out_dim].set(raw["w5"])
    b5 = jnp.zeros((1, hidden), jnp.float32).at[0, :out_dim].set(raw["b5"][0])

    biases = jnp.zeros((8, hidden), jnp.float32)
    biases = biases.at[0:1].set(b1).at[1:2].set(b2).at[2:3].set(b3)
    biases = biases.at[3:4].set(b4).at[4:5].set(b5)

    return {
        "w1": w1,                                        # (128, H)   bf16
        "w234": jnp.stack([w2, w3, w4], axis=0),         # (3, H, H)  bf16
        "w5": w5.astype(jnp.bfloat16),                   # (H, 128)   bf16
        "biases": biases,                                # (8, H)     f32
    }


def reference_forward_f32(emoca_features, raw, eps=1e-5, n_expression=7):
    """PyTorch-equivalent f32 forward: Linear -> BatchNorm(eval) -> LeakyReLU."""
    h = emoca_features.astype(jnp.float32)
    for i in (1, 2, 3, 4):
        y = h @ raw[f"w{i}"] + raw[f"b{i}"]
        y = raw[f"g{i}"] * (y - raw[f"m{i}"]) / jnp.sqrt(raw[f"v{i}"] + eps) + raw[f"be{i}"]
        h = jnp.where(y > 0, y, 0.2 * y)                 # LeakyReLU(0.2)
    out = h @ raw["w5"] + raw["b5"]
    return out[:, :n_expression]


if __name__ == "__main__":
    # Small shapes consistent with the module's forward.  Frames are batched
    # into one call (per perf review) so weights/launch overhead amortize:
    #   16 frames x 16 samples = 256 rows -> grid=(2,) tiles of 128.
    N_FRAMES, B_PER_FRAME = 16, 16
    B = N_FRAMES * B_PER_FRAME                 # 256
    N_KEYS, N_PER_KEY = 3, 16
    INPUT_SIZE = N_KEYS * N_PER_KEY            # 48
    HIDDEN = 256
    OUTPUT = 10

    key = jax.random.PRNGKey(0)
    k_feat, k_par = jax.random.split(key, 2)

    # Mimic `emoca_feature`: dict of lists of per-sample [B] feature tensors.
    feat_keys = jax.random.split(k_feat, N_KEYS * N_PER_KEY)
    emoca_feature = {
        f"key{i}": [jax.random.normal(feat_keys[i * N_PER_KEY + j], (B,), jnp.float32)
                    for j in range(N_PER_KEY)]
        for i in range(N_KEYS)
    }
    # Glue equivalent of torch.stack(..., dim=1) per key + torch.cat(dim=1).
    # (The PyTorch forward's `x` argument is unused; only emoca_feature is.)
    emoca_features = jnp.concatenate(
        [jnp.stack(emoca_feature[k], axis=1) for k in emoca_feature], axis=1)

    raw = make_raw_params(k_par, INPUT_SIZE, HIDDEN, OUTPUT)
    prepared = prepare_params(raw)

    expression = smirk_recognition_forward(emoca_features, prepared)
    expression = jax.block_until_ready(expression)

    ref = reference_forward_f32(emoca_features, raw)
    assert expression.shape == (B, 7), expression.shape
    max_err = float(jnp.max(jnp.abs(expression - ref)))
    assert jnp.allclose(expression, ref, atol=7e-2, rtol=5e-2), (
        f"mismatch vs f32 reference, max_abs_err={max_err}")
    print("KERNEL_OK")
</pallas_src>

<mosaic_0001>
module attributes {stable_mosaic.version = 11 : i64} {
  func.func @_smirk_mlp_kernel(%arg0: i32, %arg1: memref<128x128xbf16, #tpu.memory_space<vmem>>, %arg2: memref<128x256xbf16, #tpu.memory_space<vmem>>, %arg3: memref<3x256x256xbf16, #tpu.memory_space<vmem>>, %arg4: memref<256x128xbf16, #tpu.memory_space<vmem>>, %arg5: memref<8x256xf32, #tpu.memory_space<vmem>>, %arg6: memref<128x128xf32, #tpu.memory_space<vmem>>) attributes {dimension_semantics = [#tpu.dimension_semantics<parallel>], iteration_bounds = array<i64: 2>, scalar_prefetch = 0 : i64, scratch_operands = 0 : i64, tpu.core_type = #tpu.core_type<tc>, window_params = [{transform_indices = @transform_0, window_bounds = array<i64: 128, 128>}, {pipeline_mode = #tpu.pipeline_mode<synchronous>, transform_indices = @transform_1, window_bounds = array<i64: 128, 256>}, {pipeline_mode = #tpu.pipeline_mode<synchronous>, transform_indices = @transform_2, window_bounds = array<i64: 3, 256, 256>}, {pipeline_mode = #tpu.pipeline_mode<synchronous>, transform_indices = @transform_3, window_bounds = array<i64: 256, 128>}, {pipeline_mode = #tpu.pipeline_mode<synchronous>, transform_indices = @transform_4, window_bounds = array<i64: 8, 256>}, {transform_indices = @transform_5, window_bounds = array<i64: 128, 128>}]} {
    %c0 = arith.constant 0 : index
    %c0_0 = arith.constant 0 : index
    %0 = vector.load %arg5[%c0, %c0_0] : memref<8x256xf32, #tpu.memory_space<vmem>>, vector<8x256xf32>
    %c0_1 = arith.constant 0 : index
    %c0_2 = arith.constant 0 : index
    %1 = vector.load %arg1[%c0_1, %c0_2] : memref<128x128xbf16, #tpu.memory_space<vmem>>, vector<128x128xbf16>
    %c0_3 = arith.constant 0 : index
    %c0_4 = arith.constant 0 : index
    %2 = vector.load %arg2[%c0_3, %c0_4] : memref<128x256xbf16, #tpu.memory_space<vmem>>, vector<128x256xbf16>
    %cst = arith.constant dense<0.000000e+00> : vector<128x256xf32>
    %3 = tpu.matmul %1, %2, %cst {dimension_numbers = #tpu.dot_dimension_numbers<[1], [0], [0], [1], [0, 0, 1, 1], [], []>} : vector<128x128xbf16>, vector<128x256xbf16>, vector<128x256xf32> -> vector<128x256xf32>
    %4 = vector.extract_strided_slice %0 {offsets = [0, 0], sizes = [1, 256], strides = [1, 1]} : vector<8x256xf32> to vector<1x256xf32>
    %5 = vector.broadcast %4 : vector<1x256xf32> to vector<128x256xf32>
    %6 = arith.addf %3, %5 : vector<128x256xf32>
    %cst_5 = arith.constant 2.000000e-01 : f32
    %7 = vector.broadcast %cst_5 : f32 to vector<128x256xf32>
    %8 = arith.mulf %7, %6 : vector<128x256xf32>
    %9 = arith.maximumf %6, %8 : vector<128x256xf32>
    %c0_6 = arith.constant 0 : index
    %c0_7 = arith.constant 0 : index
    %c0_8 = arith.constant 0 : index
    %10 = vector.load %arg3[%c0_6, %c0_7, %c0_8] : memref<3x256x256xbf16, #tpu.memory_space<vmem>>, vector<1x256x256xbf16>
    %11 = vector.shape_cast %10 : vector<1x256x256xbf16> to vector<256x256xbf16>
    %12 = arith.truncf %9 : vector<128x256xf32> to vector<128x256xbf16>
    %cst_9 = arith.constant dense<0.000000e+00> : vector<128x256xf32>
    %13 = tpu.matmul %12, %11, %cst_9 {dimension_numbers = #tpu.dot_dimension_numbers<[1], [0], [0], [1], [0, 0, 1, 1], [], []>} : vector<128x256xbf16>, vector<256x256xbf16>, vector<128x256xf32> -> vector<128x256xf32>
    %14 = vector.extract_strided_slice %0 {offsets = [1, 0], sizes = [1, 256], strides = [1, 1]} : vector<8x256xf32> to vector<1x256xf32>
    %15 = vector.broadcast %14 : vector<1x256xf32> to vector<128x256xf32>
    %16 = arith.addf %13, %15 : vector<128x256xf32>
    %cst_10 = arith.constant 2.000000e-01 : f32
    %17 = vector.broadcast %cst_10 : f32 to vector<128x256xf32>
    %18 = arith.mulf %17, %16 : vector<128x256xf32>
    %19 = arith.maximumf %16, %18 : vector<128x256xf32>
    %c1 = arith.constant 1 : index
    %c0_11 = arith.constant 0 : index
    %c0_12 = arith.constant 0 : index
    %20 = vector.load %arg3[%c1, %c0_11, %c0_12] : memref<3x256x256xbf16, #tpu.memory_space<vmem>>, vector<1x256x256xbf16>
    %21 = vector.shape_cast %20 : vector<1x256x256xbf16> to vector<256x256xbf16>
    %22 = arith.truncf %19 : vector<128x256xf32> to vector<128x256xbf16>
    %cst_13 = arith.constant dense<0.000000e+00> : vector<128x256xf32>
    %23 = tpu.matmul %22, %21, %cst_13 {dimension_numbers = #tpu.dot_dimension_numbers<[1], [0], [0], [1], [0, 0, 1, 1], [], []>} : vector<128x256xbf16>, vector<256x256xbf16>, vector<128x256xf32> -> vector<128x256xf32>
    %24 = vector.extract_strided_slice %0 {offsets = [2, 0], sizes = [1, 256], strides = [1, 1]} : vector<8x256xf32> to vector<1x256xf32>
    %25 = vector.broadcast %24 : vector<1x256xf32> to vector<128x256xf32>
    %26 = arith.addf %23, %25 : vector<128x256xf32>
    %cst_14 = arith.constant 2.000000e-01 : f32
    %27 = vector.broadcast %cst_14 : f32 to vector<128x256xf32>
    %28 = arith.mulf %27, %26 : vector<128x256xf32>
    %29 = arith.maximumf %26, %28 : vector<128x256xf32>
    %c2 = arith.constant 2 : index
    %c0_15 = arith.constant 0 : index
    %c0_16 = arith.constant 0 : index
    %30 = vector.load %arg3[%c2, %c0_15, %c0_16] : memref<3x256x256xbf16, #tpu.memory_space<vmem>>, vector<1x256x256xbf16>
    %31 = vector.shape_cast %30 : vector<1x256x256xbf16> to vector<256x256xbf16>
    %32 = arith.truncf %29 : vector<128x256xf32> to vector<128x256xbf16>
    %cst_17 = arith.constant dense<0.000000e+00> : vector<128x256xf32>
    %33 = tpu.matmul %32, %31, %cst_17 {dimension_numbers = #tpu.dot_dimension_numbers<[1], [0], [0], [1], [0, 0, 1, 1], [], []>} : vector<128x256xbf16>, vector<256x256xbf16>, vector<128x256xf32> -> vector<128x256xf32>
    %34 = vector.extract_strided_slice %0 {offsets = [3, 0], sizes = [1, 256], strides = [1, 1]} : vector<8x256xf32> to vector<1x256xf32>
    %35 = vector.broadcast %34 : vector<1x256xf32> to vector<128x256xf32>
    %36 = arith.addf %33, %35 : vector<128x256xf32>
    %cst_18 = arith.constant 2.000000e-01 : f32
    %37 = vector.broadcast %cst_18 : f32 to vector<128x256xf32>
    %38 = arith.mulf %37, %36 : vector<128x256xf32>
    %39 = arith.maximumf %36, %38 : vector<128x256xf32>
    %40 = arith.truncf %39 : vector<128x256xf32> to vector<128x256xbf16>
    %c0_19 = arith.constant 0 : index
    %c0_20 = arith.constant 0 : index
    %41 = vector.load %arg4[%c0_19, %c0_20] : memref<256x128xbf16, #tpu.memory_space<vmem>>, vector<256x128xbf16>
    %cst_21 = arith.constant dense<0.000000e+00> : vector<128x128xf32>
    %42 = tpu.matmul %40, %41, %cst_21 {dimension_numbers = #tpu.dot_dimension_numbers<[1], [0], [0], [1], [0, 0, 1, 1], [], []>} : vector<128x256xbf16>, vector<256x128xbf16>, vector<128x128xf32> -> vector<128x128xf32>
    %43 = vector.extract_strided_slice %0 {offsets = [4, 0], sizes = [1, 128], strides = [1, 1]} : vector<8x256xf32> to vector<1x128xf32>
    %44 = vector.broadcast %43 : vector<1x128xf32> to vector<128x128xf32>
    %45 = arith.addf %42, %44 : vector<128x128xf32>
    %c0_22 = arith.constant 0 : index
    %c0_23 = arith.constant 0 : index
    %46 = vector.load %arg6[%c0_22, %c0_23] : memref<128x128xf32, #tpu.memory_space<vmem>>, vector<128x128xf32>
    tpu.vector_store %arg6[%c0_22, %c0_23], %45 {strides = array<i32>} : memref<128x128xf32, #tpu.memory_space<vmem>>, vector<128x128xf32>,
    return
  }
  func.func @transform_0(%arg0: i32) -> (i32, i32) {
    %c0_i32 = arith.constant 0 : i32
    %c0_i32_0 = arith.constant 0 : i32
    return %arg0, %c0_i32 : i32, i32
  }
  func.func @transform_1(%arg0: i32) -> (i32, i32) {
    %c0_i32 = arith.constant 0 : i32
    %c0_i32_0 = arith.constant 0 : i32
    %c0_i32_1 = arith.constant 0 : i32
    return %c0_i32, %c0_i32_0 : i32, i32
  }
  func.func @transform_2(%arg0: i32) -> (i32, i32, i32) {
    %c0_i32 = arith.constant 0 : i32
    %c0_i32_0 = arith.constant 0 : i32
    %c0_i32_1 = arith.constant 0 : i32
    %c0_i32_2 = arith.constant 0 : i32
    return %c0_i32, %c0_i32_0, %c0_i32_1 : i32, i32, i32
  }
  func.func @transform_3(%arg0: i32) -> (i32, i32) {
    %c0_i32 = arith.constant 0 : i32
    %c0_i32_0 = arith.constant 0 : i32
    %c0_i32_1 = arith.constant 0 : i32
    return %c0_i32, %c0_i32_0 : i32, i32
  }
  func.func @transform_4(%arg0: i32) -> (i32, i32) {
    %c0_i32 = arith.constant 0 : i32
    %c0_i32_0 = arith.constant 0 : i32
    %c0_i32_1 = arith.constant 0 : i32
    return %c0_i32, %c0_i32_0 : i32, i32
  }
  func.func @transform_5(%arg0: i32) -> (i32, i32) {
    %c0_i32 = arith.constant 0 : i32
    %c0_i32_0 = arith.constant 0 : i32
    return %arg0, %c0_i32 : i32, i32
  }
}

</mosaic_0001>

<bundles_post_ra>
// kernel: tpu_custom_call.1
= control target key start
LH: loop header
LB: loop body
LE: loop exit
PB: predicated region body
PF: predicated region fallthrough
CT: control target
= control target key end

     0   :  { %10 = vsyncpa [#allocation3], 0  ;;  %s3450_s0 = inlined_call_operand.hbm [shape: bf16[256,128], index: 0, kind: input, shape index: {}]   ;;  %s3451_s1 = inlined_call_operand.hbm [shape: bf16[128,256], index: 1, kind: input, shape index: {}]   ;;  %s3452_s2 = inlined_call_operand.hbm [shape: bf16[3,256,256], index: 2, kind: input, shape index: {}]   ;;  %s3453_s3 = inlined_call_operand.hbm [shape: bf16[256,128], index: 3, kind: input, shape index: {}]   ;;  %s3454_s4 = inlined_call_operand.hbm [shape: f32[8,256], index: 4, kind: input, shape index: {}]   ;;  %s3455_s5 = inlined_call_operand.hbm [shape: f32[256,128], index: 5, kind: output, shape index: {}]  }
   0x1   :  { %12 = vsyncpa [#allocation3 + $0x1], 0 }
   0x2   :  { %13 = vsyncpa [#allocation6], 0 }
   0x3   :  { %14 = vsyncpa [#allocation9], 0 }
   0x4   :  { %15 = vsyncpa [#allocation4], 0 }
   0x5   :  { %17 = vsyncpa [#allocation4 + $0x1], 0  ;;  %s2993_s18 = smov 0   ;;  %s2995_s19 = smov 0  }
   0x6   :  { %s2997_s20 = smov 0   ;;  %s2999_s21 = smov 0  }
   0x7 LB: > { %s3014_s22 = sadd.s32 4294967295, %s2948_s21   ;;  %s2216_s23 = sadd.s32 4294967294, %s2948_s21   ;;  %s2948_s21 = sphi %s2999_s21, %s3481_s21   ;;  %s2944_s20 = sphi %s2997_s20, %s3480_s20   ;;  %s2940_s19 = sphi %s2995_s19, %s3479_s19   ;;  %s2936_s18 = sphi %s2993_s18, %s3478_s18  }
   0x8   : > { %p43_p0 = scmp.ne.s32.totalorder %s2940_s19, %s2936_s18  ;;  %p3456_p1 = scmp.eq.s32.totalorder %s3014_s22, 0 }
   0x9   : > { %p157_p3 = scmp.eq.s32.totalorder %s2216_s23, 1  ;;  %p2217_p5 = scmp.ge.s32.totalorder %s2948_s21, 1 }
   0xa   : > { %p3023_p4 = por %p3456_p1, %p43_p0  ;;  %p164_p7 = scmp.lt.s32.totalorder %s2948_s21, 3 }
   0xb   : > { %p3028_p6 = por %p157_p3, %p43_p0  ;;  %s2950_s27 = smov [#allocation5]  }
   0xc   : > { %s3461_s24 = scalar_select %p3023_p4, 1, 0 }
   0xd   : > { %s3462_s25 = scalar_select %p3028_p6, 1, 0 }
   0xe   : > { %p3033_p8 = pnand %p2217_p5, %p164_p7  ;;  %s176_s28 = sshll.u32 %s2950_s27, 4  ;;  %s177_s28 = int_to_ptr.vmem [resolvable:$true] %s176_s28 }
   0xf   : > { %s2951_s30 = smov [#allocation8]   ;;  %s2755_s7 = scalar_lea.vmem %s177_s28, 2048 }
  0x10   : > { %s3463_s26 = scalar_select %p3033_p8, 1, 0 }
  0x11   : > { %p2476_p9 = pneg %p3033_p8  ;;  %s202_s6 = sshll.u32 %s2951_s30, 4  ;;  %s203_s6 = int_to_ptr.vmem [resolvable:$true] %s202_s6 }
  0x12   : > { %p2756_p13 = scmp.ne.s32.totalorder %s177_s28, %s2755_s7  ;;  %p2763_p5 = scmp.lt.s32.totalorder %s177_s28, %s177_s28 }
  0x13   : > { %p3042_p11 = pnand %p2476_p9, %p3456_p1  ;;  %p2764_p7 = scmp.lt.s32.totalorder %s2755_s7, %s2755_s7 }
  0x15   : > { %p2746_p12 = pneg %p3042_p11  ;;  %p2765_p10 = por %p2764_p7, %p2763_p5 }
  0x17   : > { %p2758_p0 = pnand %p2756_p13, %p2746_p12 }
  0x19   : > { %p2759_p3 = pneg %p2758_p0 }
  0x1b   : > { %p2766_p9 = pnand %p2765_p10, %p2759_p3 }
  0x1d   : > { %2769 = shalt.err (!%p2766_p9)
}
  0x1e   : > { %s2952_s8 = smov 128   ;;  %s2953_s9 = smov 8  }
  0x1f   : > { %2479 = dma.hbm_to_vmem [thread:$0]  (!%p3042_p11), %s3451_s1, 2048, %s177_s28, [#allocation6], %s2952_s8, %s2952_s8, %s2953_s9  }
  0x20   : > { %s2781_s12 = scalar_lea.vmem %s203_s6, 2048  ;;  %p2789_p10 = scmp.lt.s32.totalorder %s203_s6, %s203_s6 }
  0x21   : > { %p2782_p13 = scmp.ne.s32.totalorder %s203_s6, %s2781_s12  ;;  %p2790_p3 = scmp.lt.s32.totalorder %s2781_s12, %s2781_s12 }
  0x23   : > { %p2784_p0 = pnand %p2782_p13, %p2746_p12  ;;  %p2791_p7 = por %p2790_p3, %p2789_p10 }
  0x25   : > { %p2785_p5 = pneg %p2784_p0 }
  0x27   : > { %p2792_p9 = pnand %p2791_p7, %p2785_p5 }
  0x29   : > { %2795 = shalt.err (!%p2792_p9)
}
  0x2a   : > { %s3457_s13 = smov 64   ;;  %s2955_s14 = smov 4  }
  0x2b   : > { %2485 = dma.hbm_to_vmem [thread:$0]  (!%p3042_p11), %s3453_s3, 2048, %s203_s6, [#allocation9], %s3457_s13, %s3457_s13, %s2955_s14  }
  0x2c   : > { %s2956_s17 = smov [#allocation7]   ;;  %s2957_s27 = smov [#allocation10]  }
  0x2d   : > { %s189_s23 = sshll.u32 %s2956_s17, 4  ;;  %s216_s28 = sshll.u32 %s2957_s27, 4  ;;  %s190_s23 = int_to_ptr.vmem [resolvable:$true] %s189_s23  ;;  %s217_s28 = int_to_ptr.vmem [resolvable:$true] %s216_s28 }
  0x2e   : > { %s2807_s30 = scalar_lea.vmem %s190_s23, 12288  ;;  %p2815_p10 = scmp.lt.s32.totalorder %s190_s23, %s190_s23 }
  0x2f   : > { %p2808_p13 = scmp.ne.s32.totalorder %s190_s23, %s2807_s30  ;;  %p2816_p3 = scmp.lt.s32.totalorder %s2807_s30, %s2807_s30 }
  0x31   : > { %p2810_p0 = pnand %p2808_p13, %p2746_p12  ;;  %p2817_p7 = por %p2816_p3, %p2815_p10 }
  0x33   : > { %p2811_p5 = pneg %p2810_p0 }
  0x35   : > { %p2818_p9 = pnand %p2817_p7, %p2811_p5 }
  0x37   : > { %2821 = shalt.err (!%p2818_p9)
}
  0x38   : > { %2482 = dma.hbm_to_vmem [thread:$0]  (!%p3042_p11), %s3452_s2, 12288, %s190_s23, [#allocation6], %s2952_s8, %s2952_s8, %s2953_s9  }
  0x39   : > { %s2833_s10 = scalar_lea.vmem %s217_s28, 256  ;;  %p2841_p2 = scmp.lt.s32.totalorder %s217_s28, %s217_s28 }
  0x3a   : > { %p2834_p1 = scmp.ne.s32.totalorder %s217_s28, %s2833_s10  ;;  %p2842_p10 = scmp.lt.s32.totalorder %s2833_s10, %s2833_s10 }
  0x3c   : > { %p2836_p13 = pnand %p2834_p1, %p2746_p12  ;;  %p2843_p5 = por %p2842_p10, %p2841_p2 }
  0x3e   : > { %p2837_p0 = pneg %p2836_p13 }
  0x40   : > { %p2844_p3 = pnand %p2843_p5, %p2837_p0 }
  0x42   : > { %2847 = shalt.err (!%p2844_p3)
}
  0x43   : > { %2488 = dma.hbm_to_vmem [thread:$0]  (!%p3042_p11), %s3454_s4, 256, %s217_s28, [#allocation9]  }
  0x44   : > { %s3090_s8 = sadd.s32 1, %s2948_s21   ;;  %s30_s29 = sadd.s32 1, %s2944_s20 }
  0x45   : > { %s27_s9 = ssub.s32 %s2948_s21, %s3090_s8  ;;  %p37_p2 = scmp.ne.s32.totalorder %s2944_s20, %s2940_s19 }
  0x46   : > { %p28_p1 = scmp.eq.s32.totalorder %s27_s9, 0  ;;  %p38_p12 = scmp.eq.s32.totalorder %s2948_s21, 0 }
  0x47   : > { %p3465_p9 = scmp.eq.s32.totalorder %s3014_s22, 1  ;;  %p2501_p0 = scmp.lt.s32.totalorder %s2948_s21, 2 }
  0x48   : > { %s3099_s15 = scalar_select %p28_p1, %s2944_s20, %s30_s29  }
  0x49   : > { %p39_p7 = por %p38_p12, %p37_p2  ;;  %p3103_p13 = por %p3465_p9, %p37_p2 }
  0x4a   : > { %s227_s17 = sand.u32 1, %s2944_s20   ;;  %s2374_s27 = sshll.u32 %s2948_s21, 10 }
  0x4b   : > { %s3466_s16 = scalar_select %p3103_p13, 1, 0 }
  0x4c   : > { %s2223_s23 = sshll.u32 %s227_s17, 6  ;;  %s3113_s6 = scalar_lea.hbm %s3450_s0, %s2374_s27 }
  0x4d   : > { %s231_s7 = scalar_lea.vmem [#allocation2], %s2223_s23  ;;  %p3117_p11 = pnand %p2501_p0, %p39_p7 }
  0x4e   : > { %s238_s10 = sshll.u32 %s231_s7, 4  ;;  %s3121_s12 = scalar_lea.sflag [#allocation3], %s227_s17  ;;  %s3115_s10 = int_to_ptr.vmem [resolvable:$true] %s238_s10 }
  0x4f   : > { %s2848_s9 = scalar_lea.hbm %s3113_s6, 1024  ;;  %p2850_p5 = pneg %p3117_p11 }
  0x50   : > { %p2849_p10 = scmp.ne.s32.totalorder %s3113_s6, %s2848_s9  ;;  %s2853_s23 = scalar_lea.hbm %s3450_s0, 2048 }
  0x51   : > { %p2854_p2 = scmp.lt.s32.totalorder %s3113_s6, %s3450_s0  ;;  %p2855_p12 = scmp.lt.s32.totalorder %s2853_s23, %s2848_s9 }
  0x52   : > { %p2851_p3 = pnand %p2850_p5, %p2849_p10 }
  0x53   : > { %p2856_p7 = por %p2855_p12, %p2854_p2 }
  0x54   : > { %p2852_p1 = pneg %p2851_p3 }
  0x56   : > { %p2857_p9 = pnand %p2856_p7, %p2852_p1 }
  0x58   : > { %2860 = shalt.err (!%p2857_p9)
}
  0x59   : > { %s2861_s17 = scalar_lea.vmem %s3115_s10, 1024  ;;  %s2958_s7 = smov [#allocation2]  }
  0x5a   : > { %p2862_p0 = scmp.ne.s32.totalorder %s3115_s10, %s2861_s17  ;;  %s2866_s13 = sshll.u32 %s2958_s7, 4  ;;  %s2867_s13 = int_to_ptr.vmem [resolvable:$false] %s2866_s13 }
  0x5b   : > { %s2868_s29 = scalar_lea.vmem %s2867_s13, 2048  ;;  %p2869_p3 = scmp.lt.s32.totalorder %s3115_s10, %s2867_s13 }
  0x5c   : > { %p2864_p6 = pnand %p2862_p0, %p2850_p5  ;;  %p2870_p13 = scmp.lt.s32.totalorder %s2868_s29, %s2861_s17 }
  0x5e   : > { %p2865_p10 = pneg %p2864_p6  ;;  %p2871_p4 = por %p2870_p13, %p2869_p3 }
  0x60   : > { %p2872_p8 = pnand %p2871_p4, %p2865_p10 }
  0x62   : > { %2875 = shalt.err (!%p2872_p8)
}
  0x63   : > { %s3468_s9 = smov 64   ;;  %p3469_p6 = scmp.ne.s32.totalorder %s3463_s26, 0 }
  0x64   : > { %2492 = dma.hbm_to_vmem [thread:$0]  (!%p3117_p11), %s3113_s6, 1024, %s3115_s10, %s3121_s12, %s3468_s9, %s3468_s9, %s2955_s14  }
  0x65   : > { %250 = sbr.rel (%p3469_p6) target bundleno = 1251 (0x4e3), region = 40  ;;  %s3148_s27 = sand.u32 (!%p3469_p6), 1, %s2940_s19  }
  0x66   : > { %s2227_s13 = sshll.u32 (!%p3469_p6), %s3148_s27, 6  ;;  %s253_s23 = scalar_lea.sflag (!%p3469_p6), [#allocation3], %s3148_s27 }
  0x67   : > { %s3152_s28 = scalar_lea.vmem (!%p3469_p6), [#allocation2], %s2227_s13  ;;  %p3470_p4 = scmp.ne.s32.totalorder (!%p3469_p6), %s3461_s24, 0 }
  0x6a   : > { %2919 = dma.done.wait (%p3470_p4), %s253_s23, 1024  }
  0x6b   : > { %2921 = vsyncadd (%p3470_p4), %s253_s23, 4294966272  ;;  %p3471_p8 = scmp.eq.s32.totalorder %s3014_s22, 0 }
  0x6d   : > { %2923 = dma.done.wait (%p3471_p8), [#allocation6], 14336   ;;  %p3472_p13 = pmov %p3471_p8 }
  0x6e   : > { %p3473_p11 = pmov %p3471_p8 }
  0x6f   : > { %2925 = vsyncadd (%p3472_p13), [#allocation6], 4294952960 }
  0x70   : > { %2927 = dma.done.wait (%p3473_p11), [#allocation9], 2304   ;;  %p3474_p5 = pmov %p3471_p8 }
  0x71   : > { %v2959_v0 = vmov 0   ;;  %v2550_v1 = vld [vmem:[#allocation5 + $0x74] ss:$8 sps:$4 sm:$0xff]   ;;  %v2552_v2 = vld [vmem:[#allocation5 + $0x70] ss:$8 sps:$4 sm:$0xff]   ;;  %v2574_v24 = vld [vmem:[%s3152_s28] sm:$0xff]  }
  0x72   : > { %2929 = vsyncadd (%p3474_p5), [#allocation9], 4294964992  ;;  %504 = vmatprep.mubr.bf16.mxu0 %v2959_v0  ;;  %472 = vmatprep.subr.bf16.mxu0 %v2550_v1  ;;  %v2553_v3 = vld [vmem:[#allocation5 + $0x64] ss:$8 sps:$4 sm:$0xff]   ;;  %v2555_v4 = vld [vmem:[#allocation5 + $0x60] ss:$8 sps:$4 sm:$0xff]  }
  0x73   : > { %473 = vmatpush1.bf16.msra.mxu0 %v2552_v2  ;;  %v2556_v5 = vld [vmem:[#allocation5 + $0x54] ss:$8 sps:$4 sm:$0xff]   ;;  %v2558_v6 = vld [vmem:[#allocation5 + $0x50] ss:$8 sps:$4 sm:$0xff]   ;;  %v2559_v7 = vld [vmem:[#allocation5 + $0x44] ss:$8 sps:$4 sm:$0xff]  }
  0x74   : > { %474 = vmatprep.subr.bf16.mxu0 %v2553_v3  ;;  %v2561_v8 = vld [vmem:[#allocation5 + $0x40] ss:$8 sps:$4 sm:$0xff]   ;;  %v2562_v9 = vld [vmem:[#allocation5 + $0x34] ss:$8 sps:$4 sm:$0xff]   ;;  %v2564_v10 = vld [vmem:[#allocation5 + $0x30] ss:$8 sps:$4 sm:$0xff]  }
  0x75   : > { %v2565_v11 = vld [vmem:[#allocation5 + $0x24] ss:$8 sps:$4 sm:$0xff]   ;;  %v2567_v12 = vld [vmem:[#allocation5 + $0x20] ss:$8 sps:$4 sm:$0xff]   ;;  %v2568_v13 = vld [vmem:[#allocation5 + $0x14] ss:$8 sps:$4 sm:$0xff]  }
  0x76   : > { %v2582_v14 = vld [vmem:[#allocation7 + $0x74] ss:$8 sps:$4 sm:$0xff]   ;;  %v2584_v15 = vld [vmem:[#allocation7 + $0x70] ss:$8 sps:$4 sm:$0xff]   ;;  %v2585_v16 = vld [vmem:[#allocation7 + $0x64] ss:$8 sps:$4 sm:$0xff]  }
  0x77   : > { %475 = vmatpush1.bf16.msra.mxu0 %v2555_v4  ;;  %865 = vmatprep.subr.bf16.mxu1 %v2582_v14  ;;  %v2587_v17 = vld [vmem:[#allocation7 + $0x60] ss:$8 sps:$4 sm:$0xff]   ;;  %v2570_v18 = vld [vmem:[#allocation5 + $0x10] ss:$8 sps:$4 sm:$0xff]   ;;  %v2588_v19 = vld [vmem:[#allocation7 + $0x54] ss:$8 sps:$4 sm:$0xff]  }
  0x78   : > { %476 = vmatprep.subr.bf16.mxu0 %v2556_v5  ;;  %866 = vmatpush1.bf16.msra.mxu1 %v2584_v15  ;;  %v2571_v20 = vld [vmem:[#allocation5 + $0x4] ss:$8 sps:$4 sm:$0xff]   ;;  %v2590_v21 = vld [vmem:[#allocation7 + $0x50] ss:$8 sps:$4 sm:$0xff]   ;;  %v2573_v22 = vld [vmem:[#allocation5] ss:$8 sps:$4 sm:$0xff]  }
  0x79   : > { %867 = vmatprep.subr.bf16.mxu1 %v2585_v16  ;;  %v2591_v23 = vld [vmem:[#allocation7 + $0x44] ss:$8 sps:$4 sm:$0xff]   ;;  %v2593_v25 = vld [vmem:[#allocation7 + $0x40] ss:$8 sps:$4 sm:$0xff]   ;;  %v2594_v26 = vld [vmem:[#allocation7 + $0x34] ss:$8 sps:$4 sm:$0xff]  }
  0x7a   : > { %v2596_v27 = vld [vmem:[#allocation7 + $0x30] ss:$8 sps:$4 sm:$0xff]   ;;  %v2597_v28 = vld [vmem:[#allocation7 + $0x24] ss:$8 sps:$4 sm:$0xff]   ;;  %v2599_v30 = vld [vmem:[#allocation7 + $0x20] ss:$8 sps:$4 sm:$0xff]  }
  0x7b   : > { %477 = vmatpush1.bf16.msra.mxu0 %v2558_v6  ;;  %v2575_v29 = vld [vmem:[%s3152_s28 + $0x8] sm:$0xff]   ;;  %v2600_v31 = vld [vmem:[#allocation7 + $0x14] ss:$8 sps:$4 sm:$0xff]   ;;  %v2602_v32 = vld [vmem:[#allocation7 + $0x10] ss:$8 sps:$4 sm:$0xff]   ;;  %s2232_s24 = sshll.u32 %s3148_s27, 7 }
  0x7c   : > { %478 = vmatprep.subr.bf16.mxu0 %v2559_v7  ;;  %868 = vmatpush1.bf16.msra.mxu1 %v2587_v17  ;;  %v2603_v33 = vld [vmem:[#allocation7 + $0x4] ss:$8 sps:$4 sm:$0xff]   ;;  %v2576_v34 = vld [vmem:[%s3152_s28 + $0x10] sm:$0xff]   ;;  %v2605_v35 = vld [vmem:[#allocation7] ss:$8 sps:$4 sm:$0xff]   ;;  %v336_v17 = vlaneseq  ;;  %s3367_s26 = scalar_lea.vmem [#allocation11], %s2232_s24 }
  0x7d   : > { %869 = vmatprep.subr.bf16.mxu1 %v2588_v19  ;;  %v2606_v36 = vld [vmem:[#allocation7 + $0xf4] ss:$8 sps:$4 sm:$0xff]   ;;  %v2608_v37 = vld [vmem:[#allocation7 + $0xf0] ss:$8 sps:$4 sm:$0xff]   ;;  %v2609_v38 = vld [vmem:[#allocation7 + $0xe4] ss:$8 sps:$4 sm:$0xff]  }
  0x7e   : > { %v2577_v39 = vld [vmem:[%s3152_s28 + $0x18] sm:$0xff]   ;;  %v2611_v40 = vld [vmem:[#allocation7 + $0xe0] ss:$8 sps:$4 sm:$0xff]   ;;  %v2615_v43 = vld [vmem:[#allocation7 + $0xc4] ss:$8 sps:$4 sm:$0xff]   ;;  %s2375_s14 = sshll.u32 %s3014_s22, 11 }
  0x7f   : > { %479 = vmatpush1.bf16.msra.mxu0 %v2561_v8  ;;  %v2612_v41 = vld [vmem:[#allocation7 + $0xd4] ss:$8 sps:$4 sm:$0xff]   ;;  %v2614_v42 = vld [vmem:[#allocation7 + $0xd0] ss:$8 sps:$4 sm:$0xff]   ;;  %v2578_v44 = vld [vmem:[%s3152_s28 + $0x20] sm:$0xff]   ;;  %s2105_s6 = sshll.u32 %s3367_s26, 4  ;;  %s3403_s12 = scalar_lea.hbm %s3455_s5, %s2375_s14  ;;  %s3405_s6 = int_to_ptr.vmem [resolvable:$true] %s2105_s6 }
  0x80   : > { %480 = vmatprep.subr.bf16.mxu0 %v2562_v9  ;;  %870 = vmatpush1.bf16.msra.mxu1 %v2590_v21  ;;  %v2617_v45 = vld [vmem:[#allocation7 + $0xc0] ss:$8 sps:$4 sm:$0xff]   ;;  %v2580_v47 = vld [vmem:[%s3152_s28 + $0x30] sm:$0xff]   ;;  %v2581_v48 = vld [vmem:[%s3152_s28 + $0x38] sm:$0xff]   ;;  %s2092_s30 = scalar_lea.sflag [#allocation4], %s3148_s27  ;;  %s2876_s17 = scalar_lea.vmem %s3405_s6, 2048 }
  0x81   : > { %871 = vmatprep.subr.bf16.mxu1 %v2591_v23  ;;  %v2579_v46 = vld [vmem:[%s3152_s28 + $0x28] sm:$0xff]   ;;  %v2618_v49 = vld [vmem:[#allocation7 + $0xb4] ss:$8 sps:$4 sm:$0xff]   ;;  %v2620_v50 = vld [vmem:[#allocation7 + $0xb0] ss:$8 sps:$4 sm:$0xff]   ;;  %p2877_p1 = scmp.ne.s32.totalorder %s3405_s6, %s2876_s17  ;;  %p3475_p2 = scmp.ne.s32.totalorder %s3466_s16, 0 }
  0x82   : > { %v2621_v51 = vld [vmem:[#allocation7 + $0xa4] ss:$8 sps:$4 sm:$0xff]   ;;  %v2623_v52 = vld [vmem:[#allocation7 + $0xa0] ss:$8 sps:$4 sm:$0xff]   ;;  %v2624_v53 = vld [vmem:[#allocation7 + $0x94] ss:$8 sps:$4 sm:$0xff]  }
  0x83   : > { %481 = vmatpush1.bf16.msra.mxu0 %v2564_v10  ;;  %v2626_v54 = vld [vmem:[#allocation7 + $0x90] ss:$8 sps:$4 sm:$0xff]   ;;  %v2627_v55 = vld [vmem:[#allocation7 + $0x84] ss:$8 sps:$4 sm:$0xff]   ;;  %v2629_v56 = vld [vmem:[#allocation7 + $0x80] ss:$8 sps:$4 sm:$0xff]   ;;  %p2878_p12 = pnand %p2877_p1, %p3475_p2 }
  0x84   : > { %482 = vmatprep.subr.bf16.mxu0 %v2565_v11  ;;  %872 = vmatpush1.bf16.msra.mxu1 %v2593_v25  ;;  %v2630_v57 = vld [vmem:[#allocation7 + $0x170] ss:$8 sps:$4 sm:$0xff]   ;;  %v2632_v58 = vld [vmem:[#allocation7 + $0x174] ss:$8 sps:$4 sm:$0xff]   ;;  %v2635_v59 = vld [vmem:[#allocation7 + $0x164] ss:$8 sps:$4 sm:$0xff]  }
  0x85   : > { %873 = vmatprep.subr.bf16.mxu1 %v2594_v26  ;;  %v2633_v60 = vld [vmem:[#allocation7 + $0x160] ss:$8 sps:$4 sm:$0xff]   ;;  %v2638_v61 = vld [vmem:[#allocation7 + $0x154] ss:$8 sps:$4 sm:$0xff]   ;;  %v2636_v62 = vld [vmem:[#allocation7 + $0x150] ss:$8 sps:$4 sm:$0xff]   ;;  %p2879_p7 = pneg %p2878_p12 }
  0x86   : > { %v2641_v63 = vld [vmem:[#allocation7 + $0x144] ss:$8 sps:$4 sm:$0xff]   ;;  %v2644_v1 = vld [vmem:[#allocation7 + $0x134] ss:$8 sps:$4 sm:$0xff]   ;;  %v2642_v2 = vld [vmem:[#allocation7 + $0x130] ss:$8 sps:$4 sm:$0xff]  }
  0x87   : > { %483 = vmatpush1.bf16.msra.mxu0 %v2567_v12  ;;  %v2647_v3 = vld [vmem:[#allocation7 + $0x124] ss:$8 sps:$4 sm:$0xff]   ;;  %v2645_v4 = vld [vmem:[#allocation7 + $0x120] ss:$8 sps:$4 sm:$0xff]   ;;  %v2650_v5 = vld [vmem:[#allocation7 + $0x114] ss:$8 sps:$4 sm:$0xff]  }
  0x88   : > { %484 = vmatprep.subr.bf16.mxu0 %v2568_v13  ;;  %874 = vmatpush1.bf16.msra.mxu1 %v2596_v27  ;;  %v2648_v6 = vld [vmem:[#allocation7 + $0x110] ss:$8 sps:$4 sm:$0xff]   ;;  %v2653_v7 = vld [vmem:[#allocation7 + $0x104] ss:$8 sps:$4 sm:$0xff]   ;;  %v2651_v8 = vld [vmem:[#allocation7 + $0x100] ss:$8 sps:$4 sm:$0xff]  }
  0x89   : > { %875 = vmatprep.subr.bf16.mxu1 %v2597_v28  ;;  %v2656_v9 = vld [vmem:[#allocation7 + $0x1f4] ss:$8 sps:$4 sm:$0xff]   ;;  %v2654_v10 = vld [vmem:[#allocation7 + $0x1f0] ss:$8 sps:$4 sm:$0xff]   ;;  %v2659_v11 = vld [vmem:[#allocation7 + $0x1e4] ss:$8 sps:$4 sm:$0xff]  }
  0x8a   : > { %v2657_v12 = vld [vmem:[#allocation7 + $0x1e0] ss:$8 sps:$4 sm:$0xff]   ;;  %v2662_v13 = vld [vmem:[#allocation7 + $0x1d4] ss:$8 sps:$4 sm:$0xff]   ;;  %v2660_v14 = vld [vmem:[#allocation7 + $0x1d0] ss:$8 sps:$4 sm:$0xff]  }
  0x8b   : > { %485 = vmatpush1.bf16.msra.mxu0 %v2570_v18  ;;  %v2665_v15 = vld [vmem:[#allocation7 + $0x1c4] ss:$8 sps:$4 sm:$0xff]   ;;  %v2663_v16 = vld [vmem:[#allocation7 + $0x1c0] ss:$8 sps:$4 sm:$0xff]   ;;  %v2668_v18 = vld [vmem:[#allocation7 + $0x1b4] ss:$8 sps:$4 sm:$0xff]  }
  0x8c   : > { %486 = vmatprep.subr.bf16.mxu0 %v2571_v20  ;;  %876 = vmatpush1.bf16.msra.mxu1 %v2599_v30  ;;  %v2666_v19 = vld [vmem:[#allocation7 + $0x1b0] ss:$8 sps:$4 sm:$0xff]   ;;  %v3182_v20 = vshrl.u32 %v336_v17, 7  ;;  %v3187_v23 = vld [vmem:[#allocation10] sm:$0xff]  ;;  %s2960_s22 = smov [#allocation11]  }
  0x8d   : > { %877 = vmatprep.subr.bf16.mxu1 %v2600_v31  ;;  %s2880_s7 = sshll.u32 %s2960_s22, 4  ;;  %s2881_s7 = int_to_ptr.vmem [resolvable:$false] %s2880_s7 }
  0x8e   : > { %v338_v21 = vsub.s32 0, %v3182_v20  ;;  %s2882_s29 = scalar_lea.vmem %s2881_s7, 4096  ;;  %p2883_p9 = scmp.lt.s32.totalorder %s3405_s6, %s2881_s7 }
  0x8f   : > { %487 = vmatpush1.bf16.msra.mxu0 %v2573_v22  ;;  %v3185_v22 = vld [vmem:[#allocation10 + $0x8] sm:$0xff]  ;;  %p2884_p0 = scmp.lt.s32.totalorder %s2882_s29, %s2876_s17 }
  0x90   : > { %878 = vmatpush1.bf16.msra.mxu1 %v2602_v32  ;;  %1259 = vmatprep.subr.bf16.mxu0 %v2632_v58  ;;  %v3193_v25 = vrot.slane %v3187_v23, %v338_v21 }
  0x91   : > { %879 = vmatprep.subr.bf16.mxu1 %v2603_v33  ;;  %p2885_p10 = por %p2884_p0, %p2883_p9 }
  0x92   : > { %505 = vmatmul.mubr.bf16.vlgmr.msra.gmra.mxu0 %v2574_v24  ;;  %v3190_v24 = vrot.slane %v3185_v22, %v338_v21 }
  0x93   : > { %514 = vmatprep.mubr.bf16.mxu0 %v2959_v0  ;;  %1260 = vmatpush1.bf16.msra.mxu0 %v2630_v57  ;;  %p2886_p3 = pnand %p2885_p10, %p2879_p7 }
  0x94   : > { %880 = vmatpush1.bf16.msra.mxu1 %v2605_v35  ;;  %1261 = vmatprep.subr.bf16.mxu0 %v2635_v59 }
  0x95   : > { %881 = vmatprep.subr.bf16.mxu1 %v2606_v36 }
  0x97   : > { %1262 = vmatpush1.bf16.msra.mxu0 %v2633_v60 }
  0x98   : > { %882 = vmatpush2.bf16.msra.mxu1 %v2608_v37  ;;  %1263 = vmatprep.subr.bf16.mxu0 %v2638_v61 }
  0x99   : > { %883 = vmatprep.subr.bf16.mxu1 %v2609_v38 }
  0x9a   : > { %515 = vmatmul.mubr.bf16.gmra.mxu0 %v2575_v29 }
  0x9b   : > { %524 = vmatprep.mubr.bf16.mxu0 %v2959_v0  ;;  %1264 = vmatpush1.bf16.msra.mxu0 %v2636_v62 }
  0x9c   : > { %884 = vmatpush2.bf16.msra.mxu1 %v2611_v40  ;;  %1265 = vmatprep.subr.bf16.mxu0 %v2641_v63 }
  0x9d   : > { %885 = vmatprep.subr.bf16.mxu1 %v2612_v41 }
  0xa0   : > { %886 = vmatpush2.bf16.msra.mxu1 %v2614_v42 }
  0xa1   : > { %887 = vmatprep.subr.bf16.mxu1 %v2615_v43 }
  0xa2   : > { %525 = vmatmul.mubr.bf16.gmra.mxu0 %v2576_v34 }
  0xa3   : > { %534 = vmatprep.mubr.bf16.mxu0 %v2959_v0 }
  0xa4   : > { %888 = vmatpush2.bf16.msra.mxu1 %v2617_v45 }
  0xa5   : > { %889 = vmatprep.subr.bf16.mxu1 %v2618_v49 }
  0xa8   : > { %890 = vmatpush2.bf16.msra.mxu1 %v2620_v50 }
  0xa9   : > { %891 = vmatprep.subr.bf16.mxu1 %v2621_v51 }
  0xaa   : > { %535 = vmatmul.mubr.bf16.gmra.mxu0 %v2577_v39 }
  0xab   : > { %544 = vmatprep.mubr.bf16.mxu0 %v2959_v0 }
  0xac   : > { %892 = vmatpush2.bf16.msra.mxu1 %v2623_v52 }
  0xad   : > { %893 = vmatprep.subr.bf16.mxu1 %v2624_v53 }
  0xb0   : > { %894 = vmatpush2.bf16.msra.mxu1 %v2626_v54 }
  0xb1   : > { %895 = vmatprep.subr.bf16.mxu1 %v2627_v55 }
  0xb2   : > { %545 = vmatmul.mubr.bf16.gmra.mxu0 %v2578_v44 }
  0xb3   : > { %554 = vmatprep.mubr.bf16.mxu0 %v2959_v0 }
  0xb4   : > { %896 = vmatpush2.bf16.msra.mxu1 %v2629_v56 }
  0xba   : > { %555 = vmatmul.mubr.bf16.gmra.mxu0 %v2579_v46 }
  0xbb   : > { %564 = vmatprep.mubr.bf16.mxu0 %v2959_v0 }
  0xc2   : > { %565 = vmatmul.mubr.bf16.gmra.mxu0 %v2580_v47 }
  0xc3   : > { %574 = vmatprep.mubr.bf16.mxu0 %v2959_v0  ;;  %v2639_v0 = vld [vmem:[#allocation7 + $0x140] ss:$8 sps:$4 sm:$0xff]  }
  0xc4   : > { %1266 = vmatpush1.bf16.msra.mxu0 %v2639_v0 }
  0xc5   : > { %1267 = vmatprep.subr.bf16.mxu0 %v2644_v1 }
  0xc8   : > { %1268 = vmatpush1.bf16.msra.mxu0 %v2642_v2 }
  0xc9   : > { %1269 = vmatprep.subr.bf16.mxu0 %v2647_v3 }
  0xca   : > { %575 = vmatmul.mubr.bf16.gmra.mxu0 %v2581_v48 }
  0xcc   : > { %1270 = vmatpush1.bf16.msra.mxu0 %v2645_v4 }
  0xcd   : > { %1271 = vmatprep.subr.bf16.mxu0 %v2650_v5 }
  0xd0   : > { %1272 = vmatpush1.bf16.msra.mxu0 %v2648_v6 }
  0xd1   : > { %1273 = vmatprep.subr.bf16.mxu0 %v2653_v7 }
  0xd4   : > { %1274 = vmatpush1.bf16.msra.mxu0 %v2651_v8 }
  0xd5   : > { %1275 = vmatprep.subr.bf16.mxu0 %v2656_v9 }
  0xd8   : > { %1276 = vmatpush2.bf16.msra.mxu0 %v2654_v10 }
  0xd9   : > { %1277 = vmatprep.subr.bf16.mxu0 %v2659_v11 }
  0xdc   : > { %1278 = vmatpush2.bf16.msra.mxu0 %v2657_v12 }
  0xdd   : > { %1279 = vmatprep.subr.bf16.mxu0 %v2662_v13 }
  0xe0   : > { %1280 = vmatpush2.bf16.msra.mxu0 %v2660_v14 }
  0xe1   : > { %1281 = vmatprep.subr.bf16.mxu0 %v2665_v15 }
  0xe4   : > { %1282 = vmatpush2.bf16.msra.mxu0 %v2663_v16 }
  0xe5   : > { %1283 = vmatprep.subr.bf16.mxu0 %v2668_v18 }
  0xe8   : > { %1284 = vmatpush2.bf16.msra.mxu0 %v2666_v19 }
 0x152   : > { %v506_v26 = vpop.f32.mrf.mxu0 }
 0x153   : > { %v507_v29 = vadd.f32 %v506_v26, %v3193_v25 }
 0x154   : > { %v508_v27 = vpop.f32.mrf.mxu0 }
 0x155   : > { %v509_v28 = vadd.f32 %v508_v27, %v3190_v24  ;;  %v585_v36 = vmul.f32 0.2, %v507_v29 }
 0x156   : > { %v510_v30 = vpop.f32.mrf.mxu0 }
 0x157   : > { %v511_v31 = vadd.f32 %v510_v30, %v3193_v25  ;;  %v586_v33 = vmul.f32 0.2, %v509_v28  ;;  %v617_v44 = vmax.f32 %v507_v29, %v585_v36 }
 0x158   : > { %v512_v32 = vpop.f32.mrf.mxu0 }
 0x159   : > { %v587_v34 = vmul.f32 0.2, %v511_v31  ;;  %v513_v35 = vadd.f32 %v512_v32, %v3190_v24  ;;  %v618_v42 = vmax.f32 %v509_v28, %v586_v33 }
 0x15a   : > { %v516_v37 = vpop.f32.mrf.mxu0 }
 0x15b   : > { %v588_v38 = vmul.f32 0.2, %v513_v35  ;;  %v619_v39 = vmax.f32 %v511_v31, %v587_v34  ;;  %v517_v45 = vadd.f32 %v516_v37, %v3193_v25 }
 0x15c   : > { %v518_v40 = vpop.f32.mrf.mxu0 }
 0x15d   : > { %v519_v41 = vadd.f32 %v518_v40, %v3190_v24  ;;  %v620_v43 = vmax.f32 %v513_v35, %v588_v38  ;;  %v681_v50 = vpack.c.bf16 %v619_v39, %v617_v44  ;;  %v589_v54 = vmul.f32 0.2, %v517_v45 }
 0x15e   : > { %v520_v46 = vpop.f32.mrf.mxu0 }
 0x15f   : > { %v521_v47 = vadd.f32 %v520_v46, %v3193_v25  ;;  %v682_v48 = vpack.c.bf16 %v620_v43, %v618_v42  ;;  %v590_v51 = vmul.f32 0.2, %v519_v41  ;;  %v621_v62 = vmax.f32 %v517_v45, %v589_v54 }
 0x160   : > { %v522_v49 = vpop.f32.mrf.mxu0 }
 0x161   : > { %v591_v52 = vmul.f32 0.2, %v521_v47  ;;  %v523_v53 = vadd.f32 %v522_v49, %v3190_v24  ;;  %897 = vmatprep.mubr.bf16.mxu1 %v682_v48  ;;  %v622_v59 = vmax.f32 %v519_v41, %v590_v51 }
 0x162   : > { %v526_v55 = vpop.f32.mrf.mxu0  ;;  %898 = vmatmul.mubr.bf16.vlgmr.msra.gmra.mxu1 %v681_v50 }
 0x163   : > { %v592_v56 = vmul.f32 0.2, %v523_v53  ;;  %v623_v57 = vmax.f32 %v521_v47, %v591_v52  ;;  %v527_v63 = vadd.f32 %v526_v55, %v3193_v25 }
 0x164   : > { %v528_v58 = vpop.f32.mrf.mxu0 }
 0x165   : > { %v624_v60 = vmax.f32 %v523_v53, %v592_v56  ;;  %v529_v61 = vadd.f32 %v528_v58, %v3190_v24  ;;  %v683_v4 = vpack.c.bf16 %v623_v57, %v621_v62  ;;  %v593_v8 = vmul.f32 0.2, %v527_v63 }
 0x166   : > { %v530_v0 = vpop.f32.mrf.mxu0 }
 0x167   : > { %v531_v1 = vadd.f32 %v530_v0, %v3193_v25  ;;  %v684_v2 = vpack.c.bf16 %v624_v60, %v622_v59  ;;  %v594_v5 = vmul.f32 0.2, %v529_v61  ;;  %v625_v16 = vmax.f32 %v527_v63, %v593_v8 }
 0x168   : > { %v532_v3 = vpop.f32.mrf.mxu0 }
 0x169   : > { %v595_v6 = vmul.f32 0.2, %v531_v1  ;;  %v533_v7 = vadd.f32 %v532_v3, %v3190_v24  ;;  %907 = vmatprep.mubr.bf16.mxu1 %v684_v2  ;;  %v626_v13 = vmax.f32 %v529_v61, %v594_v5 }
 0x16a   : > { %v536_v9 = vpop.f32.mrf.mxu0  ;;  %908 = vmatmul.mubr.bf16.gmra.mxu1 %v683_v4 }
 0x16b   : > { %v596_v10 = vmul.f32 0.2, %v533_v7  ;;  %v627_v11 = vmax.f32 %v531_v1, %v595_v6  ;;  %v537_v17 = vadd.f32 %v536_v9, %v3193_v25 }
 0x16c   : > { %v538_v12 = vpop.f32.mrf.mxu0 }
 0x16d   : > { %v628_v14 = vmax.f32 %v533_v7, %v596_v10  ;;  %v539_v15 = vadd.f32 %v538_v12, %v3190_v24  ;;  %v685_v27 = vpack.c.bf16 %v627_v11, %v625_v16  ;;  %v597_v31 = vmul.f32 0.2, %v537_v17 }
 0x16e   : > { %v540_v18 = vpop.f32.mrf.mxu0 }
 0x16f   : > { %v541_v19 = vadd.f32 %v540_v18, %v3193_v25  ;;  %v686_v21 = vpack.c.bf16 %v628_v14, %v626_v13  ;;  %v598_v28 = vmul.f32 0.2, %v539_v15  ;;  %v629_v39 = vmax.f32 %v537_v17, %v597_v31 }
 0x170   : > { %v542_v26 = vpop.f32.mrf.mxu0 }
 0x171   : > { %v599_v29 = vmul.f32 0.2, %v541_v19  ;;  %v543_v30 = vadd.f32 %v542_v26, %v3190_v24  ;;  %917 = vmatprep.mubr.bf16.mxu1 %v686_v21  ;;  %v630_v36 = vmax.f32 %v539_v15, %v598_v28 }
 0x172   : > { %v546_v32 = vpop.f32.mrf.mxu0  ;;  %918 = vmatmul.mubr.bf16.gmra.mxu1 %v685_v27 }
 0x173   : > { %v600_v33 = vmul.f32 0.2, %v543_v30  ;;  %v631_v34 = vmax.f32 %v541_v19, %v599_v29  ;;  %v547_v40 = vadd.f32 %v546_v32, %v3193_v25 }
 0x174   : > { %v548_v35 = vpop.f32.mrf.mxu0 }
 0x175   : > { %v632_v37 = vmax.f32 %v543_v30, %v600_v33  ;;  %v549_v38 = vadd.f32 %v548_v35, %v3190_v24  ;;  %v687_v45 = vpack.c.bf16 %v631_v34, %v629_v39  ;;  %v601_v49 = vmul.f32 0.2, %v547_v40 }
 0x176   : > { %v550_v41 = vpop.f32.mrf.mxu0 }
 0x177   : > { %v551_v42 = vadd.f32 %v550_v41, %v3193_v25  ;;  %v688_v43 = vpack.c.bf16 %v632_v37, %v630_v36  ;;  %v602_v46 = vmul.f32 0.2, %v549_v38  ;;  %v633_v57 = vmax.f32 %v547_v40, %v601_v49 }
 0x178   : > { %v552_v44 = vpop.f32.mrf.mxu0 }
 0x179   : > { %v603_v47 = vmul.f32 0.2, %v551_v42  ;;  %v553_v48 = vadd.f32 %v552_v44, %v3190_v24  ;;  %927 = vmatprep.mubr.bf16.mxu1 %v688_v43  ;;  %v634_v54 = vmax.f32 %v549_v38, %v602_v46 }
 0x17a   : > { %v556_v50 = vpop.f32.mrf.mxu0  ;;  %928 = vmatmul.mubr.bf16.gmra.mxu1 %v687_v45 }
 0x17b   : > { %v604_v51 = vmul.f32 0.2, %v553_v48  ;;  %v635_v52 = vmax.f32 %v551_v42, %v603_v47  ;;  %v557_v58 = vadd.f32 %v556_v50, %v3193_v25 }
 0x17c   : > { %v558_v53 = vpop.f32.mrf.mxu0 }
 0x17d   : > { %v636_v55 = vmax.f32 %v553_v48, %v604_v51  ;;  %v559_v56 = vadd.f32 %v558_v53, %v3190_v24  ;;  %v689_v63 = vpack.c.bf16 %v635_v52, %v633_v57  ;;  %v605_v3 = vmul.f32 0.2, %v557_v58  ;;  %v2669_v52 = vld [vmem:[#allocation7 + $0x1a0] ss:$8 sps:$4 sm:$0xff]   ;;  %v2674_v53 = vld [vmem:[#allocation7 + $0x194] ss:$8 sps:$4 sm:$0xff]  }
 0x17e   : > { %v560_v59 = vpop.f32.mrf.mxu0  ;;  %v2680_v57 = vld [vmem:[#allocation7 + $0x274] ss:$8 sps:$4 sm:$0xff]  }
 0x17f   : > { %v561_v60 = vadd.f32 %v560_v59, %v3193_v25  ;;  %v690_v61 = vpack.c.bf16 %v636_v55, %v634_v54  ;;  %v606_v0 = vmul.f32 0.2, %v559_v56  ;;  %v637_v11 = vmax.f32 %v557_v58, %v605_v3  ;;  %v2672_v54 = vld [vmem:[#allocation7 + $0x190] ss:$8 sps:$4 sm:$0xff]   ;;  %v2675_v55 = vld [vmem:[#allocation7 + $0x180] ss:$8 sps:$4 sm:$0xff]   ;;  %1653 = vmatprep.subr.bf16.mxu1 %v2680_v57 }
 0x180   : > { %v562_v62 = vpop.f32.mrf.mxu0  ;;  %v2683_v58 = vld [vmem:[#allocation7 + $0x264] ss:$8 sps:$4 sm:$0xff]   ;;  %v2681_v59 = vld [vmem:[#allocation7 + $0x260] ss:$8 sps:$4 sm:$0xff]  }
 0x181   : > { %v607_v1 = vmul.f32 0.2, %v561_v60  ;;  %v563_v2 = vadd.f32 %v562_v62, %v3190_v24  ;;  %937 = vmatprep.mubr.bf16.mxu1 %v690_v61  ;;  %v638_v8 = vmax.f32 %v559_v56, %v606_v0  ;;  %v2678_v56 = vld [vmem:[#allocation7 + $0x270] ss:$8 sps:$4 sm:$0xff]   ;;  %v2689_v62 = vld [vmem:[#allocation7 + $0x244] ss:$8 sps:$4 sm:$0xff]  }
 0x182   : > { %v566_v4 = vpop.f32.mrf.mxu0  ;;  %938 = vmatmul.mubr.bf16.gmra.mxu1 %v689_v63  ;;  %v2684_v61 = vld [vmem:[#allocation7 + $0x250] ss:$8 sps:$4 sm:$0xff]   ;;  %v2687_v63 = vld [vmem:[#allocation7 + $0x240] ss:$8 sps:$4 sm:$0xff]   ;;  %v2692_v0 = vld [vmem:[#allocation7 + $0x234] ss:$8 sps:$4 sm:$0xff]  }
 0x183   : > { %v608_v5 = vmul.f32 0.2, %v563_v2  ;;  %v639_v6 = vmax.f32 %v561_v60, %v607_v1  ;;  %v567_v12 = vadd.f32 %v566_v4, %v3193_v25  ;;  %1654 = vmatpush1.bf16.msra.mxu1 %v2678_v56  ;;  %v2686_v60 = vld [vmem:[#allocation7 + $0x254] ss:$8 sps:$4 sm:$0xff]   ;;  %v2690_v1 = vld [vmem:[#allocation7 + $0x230] ss:$8 sps:$4 sm:$0xff]  }
 0x184   : > { %v568_v7 = vpop.f32.mrf.mxu0  ;;  %1655 = vmatprep.subr.bf16.mxu1 %v2683_v58  ;;  %v2693_v3 = vld [vmem:[#allocation7 + $0x220] ss:$8 sps:$4 sm:$0xff]   ;;  %v2698_v4 = vld [vmem:[#allocation7 + $0x214] ss:$8 sps:$4 sm:$0xff]  }
 0x185   : > { %v640_v9 = vmax.f32 %v563_v2, %v608_v5  ;;  %v569_v10 = vadd.f32 %v568_v7, %v3190_v24  ;;  %v691_v17 = vpack.c.bf16 %v639_v6, %v637_v11  ;;  %v609_v26 = vmul.f32 0.2, %v567_v12  ;;  %v2695_v2 = vld [vmem:[#allocation7 + $0x224] ss:$8 sps:$4 sm:$0xff]   ;;  %v2696_v5 = vld [vmem:[#allocation7 + $0x210] ss:$8 sps:$4 sm:$0xff]  }
 0x186   : > { %v570_v13 = vpop.f32.mrf.mxu0  ;;  %v2701_v6 = vld [vmem:[#allocation7 + $0x204] ss:$8 sps:$4 sm:$0xff]   ;;  %v2699_v7 = vld [vmem:[#allocation7 + $0x200] ss:$8 sps:$4 sm:$0xff]  }
 0x187   : > { %v571_v14 = vadd.f32 %v570_v13, %v3193_v25  ;;  %v692_v15 = vpack.c.bf16 %v640_v9, %v638_v8  ;;  %v610_v18 = vmul.f32 0.2, %v569_v10  ;;  %v641_v34 = vmax.f32 %v567_v12, %v609_v26  ;;  %1656 = vmatpush1.bf16.msra.mxu1 %v2681_v59  ;;  %v2704_v8 = vld [vmem:[#allocation7 + $0x2f4] ss:$8 sps:$4 sm:$0xff]   ;;  %v2702_v9 = vld [vmem:[#allocation7 + $0x2f0] ss:$8 sps:$4 sm:$0xff]  }
 0x188   : > { %v572_v16 = vpop.f32.mrf.mxu0  ;;  %1657 = vmatprep.subr.bf16.mxu1 %v2686_v60  ;;  %v2705_v11 = vld [vmem:[#allocation7 + $0x2e0] ss:$8 sps:$4 sm:$0xff]   ;;  %v2710_v12 = vld [vmem:[#allocation7 + $0x2d4] ss:$8 sps:$4 sm:$0xff]   ;;  %v2708_v13 = vld [vmem:[#allocation7 + $0x2d0] ss:$8 sps:$4 sm:$0xff]  }
 0x189   : > { %v611_v19 = vmul.f32 0.2, %v571_v14  ;;  %v573_v21 = vadd.f32 %v572_v16, %v3190_v24  ;;  %947 = vmatprep.mubr.bf16.mxu1 %v692_v15  ;;  %v642_v31 = vmax.f32 %v569_v10, %v610_v18  ;;  %v2707_v10 = vld [vmem:[#allocation7 + $0x2e4] ss:$8 sps:$4 sm:$0xff]   ;;  %v2711_v15 = vld [vmem:[#allocation7 + $0x2c0] ss:$8 sps:$4 sm:$0xff]  }
 0x18a   : > { %v576_v27 = vpop.f32.mrf.mxu0  ;;  %948 = vmatmul.mubr.bf16.gmra.mxu1 %v691_v17  ;;  %v2716_v16 = vld [vmem:[#allocation7 + $0x2b4] ss:$8 sps:$4 sm:$0xff]   ;;  %v2714_v17 = vld [vmem:[#allocation7 + $0x2b0] ss:$8 sps:$4 sm:$0xff]   ;;  %v699_v18 = vsub.s32 1, %v3182_v20 }
 0x18b   : > { %v612_v28 = vmul.f32 0.2, %v573_v21  ;;  %v643_v29 = vmax.f32 %v571_v14, %v611_v19  ;;  %v577_v35 = vadd.f32 %v576_v27, %v3193_v25  ;;  %1658 = vmatpush1.bf16.msra.mxu1 %v2684_v61  ;;  %v2713_v14 = vld [vmem:[#allocation7 + $0x2c4] ss:$8 sps:$4 sm:$0xff]  }
 0x18c   : > { %v578_v30 = vpop.f32.mrf.mxu0  ;;  %1659 = vmatprep.subr.bf16.mxu1 %v2689_v62  ;;  %v3229_v19 = vrot.slane %v3185_v22, %v699_v18 }
 0x18d   : > { %v644_v32 = vmax.f32 %v573_v21, %v612_v28  ;;  %v579_v33 = vadd.f32 %v578_v30, %v3190_v24  ;;  %v693_v40 = vpack.c.bf16 %v643_v29, %v641_v34  ;;  %v613_v44 = vmul.f32 0.2, %v577_v35 }
 0x18e   : > { %v580_v36 = vpop.f32.mrf.mxu0  ;;  %v3232_v21 = vrot.slane %v3187_v23, %v699_v18 }
 0x18f   : > { %v581_v37 = vadd.f32 %v580_v36, %v3193_v25  ;;  %v694_v38 = vpack.c.bf16 %v644_v32, %v642_v31  ;;  %v614_v41 = vmul.f32 0.2, %v579_v33  ;;  %v645_v49 = vmax.f32 %v577_v35, %v613_v44  ;;  %v2671_v25 = vld [vmem:[#allocation7 + $0x1a4] ss:$8 sps:$4 sm:$0xff]   ;;  %1660 = vmatpush1.bf16.msra.mxu1 %v2687_v63 }
 0x190   : > { %v582_v39 = vpop.f32.mrf.mxu0  ;;  %1285 = vmatprep.subr.bf16.mxu0 %v2671_v25  ;;  %1661 = vmatprep.subr.bf16.mxu1 %v2692_v0 }
 0x191   : > { %v615_v42 = vmul.f32 0.2, %v581_v37  ;;  %v583_v43 = vadd.f32 %v582_v39, %v3190_v24  ;;  %957 = vmatprep.mubr.bf16.mxu1 %v694_v38  ;;  %v646_v47 = vmax.f32 %v579_v33, %v614_v41  ;;  %1286 = vmatpush2.bf16.msra.mxu0 %v2669_v52  ;;  %v2677_v24 = vld [vmem:[#allocation7 + $0x184] ss:$8 sps:$4 sm:$0xff]  }
 0x192   : > { %958 = vmatmul.mubr.bf16.gmra.mxu1 %v693_v40  ;;  %1287 = vmatprep.subr.bf16.mxu0 %v2674_v53 }
 0x193   : > { %v616_v45 = vmul.f32 0.2, %v583_v43  ;;  %v647_v46 = vmax.f32 %v581_v37, %v615_v42  ;;  %1662 = vmatpush1.bf16.msra.mxu1 %v2690_v1 }
 0x194   : > { %1663 = vmatprep.subr.bf16.mxu1 %v2695_v2 }
 0x195   : > { %v648_v48 = vmax.f32 %v583_v43, %v616_v45  ;;  %v695_v51 = vpack.c.bf16 %v647_v46, %v645_v49  ;;  %1288 = vmatpush2.bf16.msra.mxu0 %v2672_v54 }
 0x196   : > { %1289 = vmatprep.subr.bf16.mxu0 %v2677_v24 }
 0x197   : > { %v696_v50 = vpack.c.bf16 %v648_v48, %v646_v47  ;;  %1664 = vmatpush1.bf16.msra.mxu1 %v2693_v3 }
 0x198   : > { %1665 = vmatprep.subr.bf16.mxu1 %v2698_v4 }
 0x199   : > { %967 = vmatprep.mubr.bf16.mxu1 %v696_v50  ;;  %1290 = vmatpush2.bf16.msra.mxu0 %v2675_v55 }
 0x19a   : > { %968 = vmatmul.mubr.bf16.gmra.mxu1 %v695_v51 }
 0x19b   : > { %1666 = vmatpush1.bf16.msra.mxu1 %v2696_v5 }
 0x19c   : > { %1667 = vmatprep.subr.bf16.mxu1 %v2701_v6 }
 0x19f   : > { %1668 = vmatpush1.bf16.msra.mxu1 %v2699_v7 }
 0x1a0   : > { %1669 = vmatprep.subr.bf16.mxu1 %v2704_v8 }
 0x1a3   : > { %1670 = vmatpush2.bf16.msra.mxu1 %v2702_v9 }
 0x1a4   : > { %1671 = vmatprep.subr.bf16.mxu1 %v2707_v10 }
 0x1a7   : > { %1672 = vmatpush2.bf16.msra.mxu1 %v2705_v11 }
 0x1a8   : > { %1673 = vmatprep.subr.bf16.mxu1 %v2710_v12 }
 0x1ab   : > { %1674 = vmatpush2.bf16.msra.mxu1 %v2708_v13 }
 0x1ac   : > { %1675 = vmatprep.subr.bf16.mxu1 %v2713_v14 }
 0x1af   : > { %1676 = vmatpush2.bf16.msra.mxu1 %v2711_v15 }
 0x1b0   : > { %1677 = vmatprep.subr.bf16.mxu1 %v2716_v16 }
 0x1b3   : > { %1678 = vmatpush2.bf16.msra.mxu1 %v2714_v17 }
 0x222   : > { %v899_v26 = vpop.f32.mrf.mxu1 }
 0x223   : > { %v900_v29 = vadd.f32 %v899_v26, %v3232_v21 }
 0x224   : > { %v901_v27 = vpop.f32.mrf.mxu1 }
 0x225   : > { %v902_v28 = vadd.f32 %v901_v27, %v3229_v19  ;;  %v978_v36 = vmul.f32 0.2, %v900_v29 }
 0x226   : > { %v903_v30 = vpop.f32.mrf.mxu1 }
 0x227   : > { %v904_v31 = vadd.f32 %v903_v30, %v3232_v21  ;;  %v979_v33 = vmul.f32 0.2, %v902_v28  ;;  %v1010_v44 = vmax.f32 %v900_v29, %v978_v36 }
 0x228   : > { %v905_v32 = vpop.f32.mrf.mxu1 }
 0x229   : > { %v980_v34 = vmul.f32 0.2, %v904_v31  ;;  %v906_v35 = vadd.f32 %v905_v32, %v3229_v19  ;;  %v1011_v41 = vmax.f32 %v902_v28, %v979_v33 }
 0x22a   : > { %v909_v37 = vpop.f32.mrf.mxu1 }
 0x22b   : > { %v981_v38 = vmul.f32 0.2, %v906_v35  ;;  %v1012_v39 = vmax.f32 %v904_v31, %v980_v34  ;;  %v910_v45 = vadd.f32 %v909_v37, %v3232_v21 }
 0x22c   : > { %v911_v40 = vpop.f32.mrf.mxu1 }
 0x22d   : > { %v1013_v42 = vmax.f32 %v906_v35, %v981_v38  ;;  %v912_v43 = vadd.f32 %v911_v40, %v3229_v19  ;;  %v1075_v49 = vpack.c.bf16 %v1012_v39, %v1010_v44  ;;  %v982_v53 = vmul.f32 0.2, %v910_v45 }
 0x22e   : > { %v913_v46 = vpop.f32.mrf.mxu1 }
 0x22f   : > { %v914_v47 = vadd.f32 %v913_v46, %v3232_v21  ;;  %v1076_v48 = vpack.c.bf16 %v1013_v42, %v1011_v41  ;;  %v983_v51 = vmul.f32 0.2, %v912_v43  ;;  %v1014_v60 = vmax.f32 %v910_v45, %v982_v53 }
 0x230   : > { %v915_v50 = vpop.f32.mrf.mxu1 }
 0x231   : > { %v984_v25 = vmul.f32 0.2, %v914_v47  ;;  %v916_v52 = vadd.f32 %v915_v50, %v3229_v19  ;;  %1291 = vmatprep.mubr.bf16.mxu0 %v1076_v48  ;;  %v1015_v57 = vmax.f32 %v912_v43, %v983_v51 }
 0x232   : > { %v919_v54 = vpop.f32.mrf.mxu1  ;;  %1292 = vmatmul.mubr.bf16.vlgmr.msra.gmra.mxu0 %v1075_v49 }
 0x233   : > { %v985_v24 = vmul.f32 0.2, %v916_v52  ;;  %v1016_v55 = vmax.f32 %v914_v47, %v984_v25  ;;  %v920_v61 = vadd.f32 %v919_v54, %v3232_v21 }
 0x234   : > { %v921_v56 = vpop.f32.mrf.mxu1 }
 0x235   : > { %v1017_v58 = vmax.f32 %v916_v52, %v985_v24  ;;  %v922_v59 = vadd.f32 %v921_v56, %v3229_v19  ;;  %v1077_v2 = vpack.c.bf16 %v1016_v55, %v1014_v60  ;;  %v986_v6 = vmul.f32 0.2, %v920_v61 }
 0x236   : > { %v923_v62 = vpop.f32.mrf.mxu1 }
 0x237   : > { %v924_v63 = vadd.f32 %v923_v62, %v3232_v21  ;;  %v1078_v0 = vpack.c.bf16 %v1017_v58, %v1015_v57  ;;  %v987_v3 = vmul.f32 0.2, %v922_v59  ;;  %v1018_v14 = vmax.f32 %v920_v61, %v986_v6 }
 0x238   : > { %v925_v1 = vpop.f32.mrf.mxu1 }
 0x239   : > { %v988_v4 = vmul.f32 0.2, %v924_v63  ;;  %v926_v5 = vadd.f32 %v925_v1, %v3229_v19  ;;  %1301 = vmatprep.mubr.bf16.mxu0 %v1078_v0  ;;  %v1019_v11 = vmax.f32 %v922_v59, %v987_v3 }
 0x23a   : > { %v929_v7 = vpop.f32.mrf.mxu1  ;;  %1302 = vmatmul.mubr.bf16.gmra.mxu0 %v1077_v2 }
 0x23b   : > { %v989_v8 = vmul.f32 0.2, %v926_v5  ;;  %v1020_v9 = vmax.f32 %v924_v63, %v988_v4  ;;  %v930_v15 = vadd.f32 %v929_v7, %v3232_v21 }
 0x23c   : > { %v931_v10 = vpop.f32.mrf.mxu1 }
 0x23d   : > { %v1021_v12 = vmax.f32 %v926_v5, %v989_v8  ;;  %v932_v13 = vadd.f32 %v931_v10, %v3229_v19  ;;  %v1079_v27 = vpack.c.bf16 %v1020_v9, %v1018_v14  ;;  %v990_v31 = vmul.f32 0.2, %v930_v15 }
 0x23e   : > { %v933_v16 = vpop.f32.mrf.mxu1 }
 0x23f   : > { %v934_v17 = vadd.f32 %v933_v16, %v3232_v21  ;;  %v1080_v18 = vpack.c.bf16 %v1021_v12, %v1019_v11  ;;  %v991_v28 = vmul.f32 0.2, %v932_v13  ;;  %v1022_v39 = vmax.f32 %v930_v15, %v990_v31 }
 0x240   : > { %v935_v26 = vpop.f32.mrf.mxu1 }
 0x241   : > { %v992_v29 = vmul.f32 0.2, %v934_v17  ;;  %v936_v30 = vadd.f32 %v935_v26, %v3229_v19  ;;  %1311 = vmatprep.mubr.bf16.mxu0 %v1080_v18  ;;  %v1023_v36 = vmax.f32 %v932_v13, %v991_v28 }
 0x242   : > { %v939_v32 = vpop.f32.mrf.mxu1  ;;  %1312 = vmatmul.mubr.bf16.gmra.mxu0 %v1079_v27 }
 0x243   : > { %v993_v33 = vmul.f32 0.2, %v936_v30  ;;  %v1024_v34 = vmax.f32 %v934_v17, %v992_v29  ;;  %v940_v40 = vadd.f32 %v939_v32, %v3232_v21 }
 0x244   : > { %v941_v35 = vpop.f32.mrf.mxu1 }
 0x245   : > { %v1025_v37 = vmax.f32 %v936_v30, %v993_v33  ;;  %v942_v38 = vadd.f32 %v941_v35, %v3229_v19  ;;  %v1081_v45 = vpack.c.bf16 %v1024_v34, %v1022_v39  ;;  %v994_v49 = vmul.f32 0.2, %v940_v40 }
 0x246   : > { %v943_v41 = vpop.f32.mrf.mxu1 }
 0x247   : > { %v944_v42 = vadd.f32 %v943_v41, %v3232_v21  ;;  %v1082_v43 = vpack.c.bf16 %v1025_v37, %v1023_v36  ;;  %v995_v46 = vmul.f32 0.2, %v942_v38  ;;  %v1026_v55 = vmax.f32 %v940_v40, %v994_v49 }
 0x248   : > { %v945_v44 = vpop.f32.mrf.mxu1 }
 0x249   : > { %v996_v47 = vmul.f32 0.2, %v944_v42  ;;  %v946_v48 = vadd.f32 %v945_v44, %v3229_v19  ;;  %1321 = vmatprep.mubr.bf16.mxu0 %v1082_v43  ;;  %v1027_v53 = vmax.f32 %v942_v38, %v995_v46 }
 0x24a   : > { %v949_v50 = vpop.f32.mrf.mxu1  ;;  %1322 = vmatmul.mubr.bf16.gmra.mxu0 %v1081_v45 }
 0x24b   : > { %v997_v51 = vmul.f32 0.2, %v946_v48  ;;  %v1028_v25 = vmax.f32 %v944_v42, %v996_v47  ;;  %v950_v56 = vadd.f32 %v949_v50, %v3232_v21 }
 0x24c   : > { %v951_v52 = vpop.f32.mrf.mxu1 }
 0x24d   : > { %v1029_v54 = vmax.f32 %v946_v48, %v997_v51  ;;  %v952_v24 = vadd.f32 %v951_v52, %v3229_v19  ;;  %v1083_v61 = vpack.c.bf16 %v1028_v25, %v1026_v55  ;;  %v998_v1 = vmul.f32 0.2, %v950_v56  ;;  %v2717_v25 = vld [vmem:[#allocation7 + $0x2a0] ss:$8 sps:$4 sm:$0xff]   ;;  %v2722_v52 = vld [vmem:[#allocation7 + $0x294] ss:$8 sps:$4 sm:$0xff]  }
 0x24e   : > { %v953_v57 = vpop.f32.mrf.mxu1  ;;  %v2727_v55 = vld [vmem:[#allocation8 + $0x38] sm:$0xff]  }
 0x24f   : > { %v954_v58 = vadd.f32 %v953_v57, %v3232_v21  ;;  %v1084_v59 = vpack.c.bf16 %v1029_v54, %v1027_v53  ;;  %v999_v62 = vmul.f32 0.2, %v952_v24  ;;  %v1030_v9 = vmax.f32 %v950_v56, %v998_v1  ;;  %v2720_v53 = vld [vmem:[#allocation7 + $0x290] ss:$8 sps:$4 sm:$0xff]   ;;  %v2723_v54 = vld [vmem:[#allocation7 + $0x280] ss:$8 sps:$4 sm:$0xff]  }
 0x250   : > { %v955_v60 = vpop.f32.mrf.mxu1  ;;  %v2728_v56 = vld [vmem:[#allocation8 + $0x70] sm:$0xff]  }
 0x251   : > { %v1000_v63 = vmul.f32 0.2, %v954_v58  ;;  %v956_v0 = vadd.f32 %v955_v60, %v3229_v19  ;;  %1331 = vmatprep.mubr.bf16.mxu0 %v1084_v59  ;;  %v1031_v6 = vmax.f32 %v952_v24, %v999_v62  ;;  %v2726_v24 = vld [vmem:[#allocation8 + $0x78] sm:$0xff]   ;;  %v2729_v57 = vld [vmem:[#allocation8 + $0x30] sm:$0xff]   ;;  %v3266_v59 = vld [vmem:[#allocation8 + $0x28] sm:$0xff]  }
 0x252   : > { %v959_v2 = vpop.f32.mrf.mxu1  ;;  %1332 = vmatmul.mubr.bf16.gmra.mxu0 %v1083_v61  ;;  %2376 = vmatprep.subr.bf16.mxu0 %v2726_v24  ;;  %v3268_v60 = vld [vmem:[#allocation8 + $0x60] sm:$0xff]   ;;  %v3274_v62 = vld [vmem:[#allocation8 + $0x58] sm:$0xff]  }
 0x253   : > { %v1001_v3 = vmul.f32 0.2, %v956_v0  ;;  %v1032_v4 = vmax.f32 %v954_v58, %v1000_v63  ;;  %v960_v10 = vadd.f32 %v959_v2, %v3232_v21  ;;  %2377 = vmatpush3.bf16.msra.mxu0 %v2727_v55  ;;  %v2730_v58 = vld [vmem:[#allocation8 + $0x68] sm:$0xff]   ;;  %v3271_v61 = vld [vmem:[#allocation8 + $0x20] sm:$0xff]   ;;  %v1093_v63 = vsub.s32 2, %v3182_v20 }
 0x254   : > { %v961_v5 = vpop.f32.mrf.mxu1  ;;  %2378 = vmatprep.subr.bf16.mxu0 %v2728_v56 }
 0x255   : > { %v1033_v7 = vmax.f32 %v956_v0, %v1001_v3  ;;  %v962_v8 = vadd.f32 %v961_v5, %v3229_v19  ;;  %v1085_v15 = vpack.c.bf16 %v1032_v4, %v1030_v9  ;;  %v1002_v26 = vmul.f32 0.2, %v960_v10 }
 0x256   : > { %v963_v11 = vpop.f32.mrf.mxu1  ;;  %v3280_v0 = vrot.slane %v3185_v22, %v1093_v63  ;;  %v3283_v1 = vrot.slane %v3187_v23, %v1093_v63 }
 0x257   : > { %v964_v12 = vadd.f32 %v963_v11, %v3232_v21  ;;  %v1086_v13 = vpack.c.bf16 %v1033_v7, %v1031_v6  ;;  %v1003_v16 = vmul.f32 0.2, %v962_v8  ;;  %v1034_v34 = vmax.f32 %v960_v10, %v1002_v26  ;;  %2379 = vmatpush3.bf16.msra.mxu0 %v2729_v57 }
 0x258   : > { %v965_v14 = vpop.f32.mrf.mxu1  ;;  %2380 = vmatprep.subr.bf16.mxu0 %v2730_v58 }
 0x259   : > { %v1004_v17 = vmul.f32 0.2, %v964_v12  ;;  %v966_v18 = vadd.f32 %v965_v14, %v3229_v19  ;;  %1341 = vmatprep.mubr.bf16.mxu0 %v1086_v13  ;;  %v1035_v31 = vmax.f32 %v962_v8, %v1003_v16 }
 0x25a   : > { %v969_v27 = vpop.f32.mrf.mxu1  ;;  %1342 = vmatmul.mubr.bf16.gmra.mxu0 %v1085_v15 }
 0x25b   : > { %v1005_v28 = vmul.f32 0.2, %v966_v18  ;;  %v1036_v29 = vmax.f32 %v964_v12, %v1004_v17  ;;  %v970_v35 = vadd.f32 %v969_v27, %v3232_v21  ;;  %2381 = vmatpush3.bf16.msra.mxu0 %v3266_v59 }
 0x25c   : > { %v971_v30 = vpop.f32.mrf.mxu1  ;;  %2382 = vmatprep.subr.bf16.mxu0 %v3268_v60 }
 0x25d   : > { %v1037_v32 = vmax.f32 %v966_v18, %v1005_v28  ;;  %v972_v33 = vadd.f32 %v971_v30, %v3229_v19  ;;  %v1087_v40 = vpack.c.bf16 %v1036_v29, %v1034_v34  ;;  %v1006_v44 = vmul.f32 0.2, %v970_v35 }
 0x25e   : > { %v973_v36 = vpop.f32.mrf.mxu1 }
 0x25f   : > { %v974_v37 = vadd.f32 %v973_v36, %v3232_v21  ;;  %v1088_v38 = vpack.c.bf16 %v1037_v32, %v1035_v31  ;;  %v1007_v41 = vmul.f32 0.2, %v972_v33  ;;  %v1038_v49 = vmax.f32 %v970_v35, %v1006_v44  ;;  %v2719_v21 = vld [vmem:[#allocation7 + $0x2a4] ss:$8 sps:$4 sm:$0xff]   ;;  %2383 = vmatpush3.bf16.msra.mxu0 %v3271_v61 }
 0x260   : > { %v975_v39 = vpop.f32.mrf.mxu1  ;;  %1679 = vmatprep.subr.bf16.mxu1 %v2719_v21  ;;  %2384 = vmatprep.subr.bf16.mxu0 %v3274_v62 }
 0x261   : > { %v1008_v42 = vmul.f32 0.2, %v974_v37  ;;  %v976_v43 = vadd.f32 %v975_v39, %v3229_v19  ;;  %1351 = vmatprep.mubr.bf16.mxu0 %v1088_v38  ;;  %v1039_v47 = vmax.f32 %v972_v33, %v1007_v41  ;;  %1680 = vmatpush2.bf16.msra.mxu1 %v2717_v25  ;;  %v2725_v19 = vld [vmem:[#allocation7 + $0x284] ss:$8 sps:$4 sm:$0xff]  }
 0x262   : > { %1352 = vmatmul.mubr.bf16.gmra.mxu0 %v1087_v40  ;;  %1681 = vmatprep.subr.bf16.mxu1 %v2722_v52 }
 0x263   : > { %v1009_v45 = vmul.f32 0.2, %v976_v43  ;;  %v1040_v46 = vmax.f32 %v974_v37, %v1008_v42 }
 0x265   : > { %v1041_v48 = vmax.f32 %v976_v43, %v1009_v45  ;;  %v1089_v51 = vpack.c.bf16 %v1040_v46, %v1038_v49  ;;  %1682 = vmatpush2.bf16.msra.mxu1 %v2720_v53 }
 0x266   : > { %1683 = vmatprep.subr.bf16.mxu1 %v2725_v19 }
 0x267   : > { %v1090_v50 = vpack.c.bf16 %v1041_v48, %v1039_v47 }
 0x269   : > { %1361 = vmatprep.mubr.bf16.mxu0 %v1090_v50  ;;  %1684 = vmatpush2.bf16.msra.mxu1 %v2723_v54 }
 0x26a   : > { %1362 = vmatmul.mubr.bf16.gmra.mxu0 %v1089_v51  ;;  %2440 = vmatprep.subr.bf16.mxu1 %v2726_v24 }
 0x2f2   : > { %v1293_v2 = vpop.f32.mrf.mxu0 }
 0x2f3   : > { %v1294_v5 = vadd.f32 %v1293_v2, %v3283_v1 }
 0x2f4   : > { %v1295_v3 = vpop.f32.mrf.mxu0 }
 0x2f5   : > { %v1296_v4 = vadd.f32 %v1295_v3, %v3280_v0  ;;  %v1372_v12 = vmul.f32 0.2, %v1294_v5 }
 0x2f6   : > { %v1297_v6 = vpop.f32.mrf.mxu0 }
 0x2f7   : > { %v1298_v7 = vadd.f32 %v1297_v6, %v3283_v1  ;;  %v1373_v9 = vmul.f32 0.2, %v1296_v4  ;;  %v1404_v18 = vmax.f32 %v1294_v5, %v1372_v12 }
 0x2f8   : > { %v1299_v8 = vpop.f32.mrf.mxu0 }
 0x2f9   : > { %v1374_v10 = vmul.f32 0.2, %v1298_v7  ;;  %v1300_v11 = vadd.f32 %v1299_v8, %v3280_v0  ;;  %v1405_v15 = vmax.f32 %v1296_v4, %v1373_v9 }
 0x2fa   : > { %v1303_v22 = vpop.f32.mrf.mxu0 }
 0x2fb   : > { %v1375_v13 = vmul.f32 0.2, %v1300_v11  ;;  %v1406_v14 = vmax.f32 %v1298_v7, %v1374_v10  ;;  %v1304_v26 = vadd.f32 %v1303_v22, %v3283_v1 }
 0x2fc   : > { %v1305_v23 = vpop.f32.mrf.mxu0 }
 0x2fd   : > { %v1407_v16 = vmax.f32 %v1300_v11, %v1375_v13  ;;  %v1306_v17 = vadd.f32 %v1305_v23, %v3280_v0  ;;  %v1469_v30 = vpack.c.bf16 %v1406_v14, %v1404_v18  ;;  %v1376_v35 = vmul.f32 0.2, %v1304_v26 }
 0x2fe   : > { %v1307_v27 = vpop.f32.mrf.mxu0 }
 0x2ff   : > { %v1308_v28 = vadd.f32 %v1307_v27, %v3283_v1  ;;  %v1470_v29 = vpack.c.bf16 %v1407_v16, %v1405_v15  ;;  %v1377_v32 = vmul.f32 0.2, %v1306_v17  ;;  %v1408_v43 = vmax.f32 %v1304_v26, %v1376_v35 }
 0x300   : > { %v1309_v31 = vpop.f32.mrf.mxu0 }
 0x301   : > { %v1378_v33 = vmul.f32 0.2, %v1308_v28  ;;  %v1310_v34 = vadd.f32 %v1309_v31, %v3280_v0  ;;  %1685 = vmatprep.mubr.bf16.mxu1 %v1470_v29  ;;  %v1409_v40 = vmax.f32 %v1306_v17, %v1377_v32 }
 0x302   : > { %v1313_v36 = vpop.f32.mrf.mxu0  ;;  %1686 = vmatmul.mubr.bf16.vlgmr.msra.gmra.mxu1 %v1469_v30 }
 0x303   : > { %v1379_v37 = vmul.f32 0.2, %v1310_v34  ;;  %2448 = vmatpush3.bf16.msra.mxu1 %v2727_v55  ;;  %v1410_v38 = vmax.f32 %v1308_v28, %v1378_v33  ;;  %v1314_v44 = vadd.f32 %v1313_v36, %v3283_v1 }
 0x304   : > { %v1315_v39 = vpop.f32.mrf.mxu0  ;;  %2441 = vmatprep.subr.bf16.mxu1 %v2728_v56 }
 0x305   : > { %v1411_v41 = vmax.f32 %v1310_v34, %v1379_v37  ;;  %v1316_v42 = vadd.f32 %v1315_v39, %v3280_v0  ;;  %v1471_v49 = vpack.c.bf16 %v1410_v38, %v1408_v43  ;;  %v1380_v25 = vmul.f32 0.2, %v1314_v44 }
 0x306   : > { %v1317_v45 = vpop.f32.mrf.mxu0 }
 0x307   : > { %v1318_v46 = vadd.f32 %v1317_v45, %v3283_v1  ;;  %v1472_v47 = vpack.c.bf16 %v1411_v41, %v1409_v40  ;;  %2449 = vmatpush3.bf16.msra.mxu1 %v2729_v57  ;;  %v1381_v50 = vmul.f32 0.2, %v1316_v42  ;;  %v1412_v57 = vmax.f32 %v1314_v44, %v1380_v25 }
 0x308   : > { %v1319_v48 = vpop.f32.mrf.mxu0  ;;  %2442 = vmatprep.subr.bf16.mxu1 %v2730_v58 }
 0x309   : > { %v1382_v51 = vmul.f32 0.2, %v1318_v46  ;;  %v1320_v21 = vadd.f32 %v1319_v48, %v3280_v0  ;;  %1695 = vmatprep.mubr.bf16.mxu1 %v1472_v47  ;;  %v1413_v24 = vmax.f32 %v1316_v42, %v1381_v50 }
 0x30a   : > { %v1323_v52 = vpop.f32.mrf.mxu0  ;;  %1696 = vmatmul.mubr.bf16.gmra.mxu1 %v1471_v49 }
 0x30b   : > { %v1383_v53 = vmul.f32 0.2, %v1320_v21  ;;  %2450 = vmatpush3.bf16.msra.mxu1 %v3266_v59  ;;  %v1414_v19 = vmax.f32 %v1318_v46, %v1382_v51  ;;  %v1324_v58 = vadd.f32 %v1323_v52, %v3283_v1 }
 0x30c   : > { %v1325_v54 = vpop.f32.mrf.mxu0  ;;  %2443 = vmatprep.subr.bf16.mxu1 %v3268_v60 }
 0x30d   : > { %v1415_v55 = vmax.f32 %v1320_v21, %v1383_v53  ;;  %v1326_v56 = vadd.f32 %v1325_v54, %v3280_v0  ;;  %v1473_v5 = vpack.c.bf16 %v1414_v19, %v1412_v57  ;;  %v1384_v7 = vmul.f32 0.2, %v1324_v58 }
 0x30e   : > { %v1327_v63 = vpop.f32.mrf.mxu0 }
 0x30f   : > { %v1328_v2 = vadd.f32 %v1327_v63, %v3283_v1  ;;  %v1474_v3 = vpack.c.bf16 %v1415_v55, %v1413_v24  ;;  %2451 = vmatpush3.bf16.msra.mxu1 %v3271_v61  ;;  %v1385_v59 = vmul.f32 0.2, %v1326_v56  ;;  %v1416_v61 = vmax.f32 %v1324_v58, %v1384_v7 }
 0x310   : > { %v1329_v4 = vpop.f32.mrf.mxu0  ;;  %2444 = vmatprep.subr.bf16.mxu1 %v3274_v62 }
 0x311   : > { %v1386_v6 = vmul.f32 0.2, %v1328_v2  ;;  %v1330_v60 = vadd.f32 %v1329_v4, %v3280_v0  ;;  %1705 = vmatprep.mubr.bf16.mxu1 %v1474_v3  ;;  %v1417_v12 = vmax.f32 %v1326_v56, %v1385_v59 }
 0x312   : > { %v1333_v8 = vpop.f32.mrf.mxu0  ;;  %1706 = vmatmul.mubr.bf16.gmra.mxu1 %v1473_v5 }
 0x313   : > { %v1387_v9 = vmul.f32 0.2, %v1330_v60  ;;  %v1418_v10 = vmax.f32 %v1328_v2, %v1386_v6  ;;  %v1334_v14 = vadd.f32 %v1333_v8, %v3283_v1 }
 0x314   : > { %v1335_v11 = vpop.f32.mrf.mxu0 }
 0x315   : > { %v1419_v22 = vmax.f32 %v1330_v60, %v1387_v9  ;;  %v1336_v13 = vadd.f32 %v1335_v11, %v3280_v0  ;;  %v1475_v17 = vpack.c.bf16 %v1418_v10, %v1416_v61  ;;  %v1388_v28 = vmul.f32 0.2, %v1334_v14 }
 0x316   : > { %v1337_v23 = vpop.f32.mrf.mxu0 }
 0x317   : > { %v1338_v62 = vadd.f32 %v1337_v23, %v3283_v1  ;;  %v1476_v15 = vpack.c.bf16 %v1419_v22, %v1417_v12  ;;  %v1389_v18 = vmul.f32 0.2, %v1336_v13  ;;  %v1420_v36 = vmax.f32 %v1334_v14, %v1388_v28 }
 0x318   : > { %v1339_v16 = vpop.f32.mrf.mxu0 }
 0x319   : > { %v1390_v26 = vmul.f32 0.2, %v1338_v62  ;;  %v1340_v27 = vadd.f32 %v1339_v16, %v3280_v0  ;;  %1715 = vmatprep.mubr.bf16.mxu1 %v1476_v15  ;;  %v1421_v33 = vmax.f32 %v1336_v13, %v1389_v18 }
 0x31a   : > { %v1343_v29 = vpop.f32.mrf.mxu0  ;;  %1716 = vmatmul.mubr.bf16.gmra.mxu1 %v1475_v17 }
 0x31b   : > { %v1391_v30 = vmul.f32 0.2, %v1340_v27  ;;  %v1422_v31 = vmax.f32 %v1338_v62, %v1390_v26  ;;  %v1344_v37 = vadd.f32 %v1343_v29, %v3283_v1  ;;  %v2736_v29 = vld [vmem:[#allocation8 + $0x50] sm:$0xff]  }
 0x31c   : > { %v1345_v32 = vpop.f32.mrf.mxu0 }
 0x31d   : > { %v1423_v34 = vmax.f32 %v1340_v27, %v1391_v30  ;;  %v1346_v35 = vadd.f32 %v1345_v32, %v3280_v0  ;;  %v1477_v42 = vpack.c.bf16 %v1422_v31, %v1420_v36  ;;  %v1392_v46 = vmul.f32 0.2, %v1344_v37  ;;  %v2737_v30 = vld [vmem:[#allocation8 + $0x10] sm:$0xff]   ;;  %v2739_v31 = vld [vmem:[#allocation8 + $0x8] sm:$0xff]   ;;  %v2740_v32 = vld [vmem:[#allocation8 + $0x40] sm:$0xff]  }
 0x31e   : > { %v1347_v38 = vpop.f32.mrf.mxu0 }
 0x31f   : > { %v1348_v39 = vadd.f32 %v1347_v38, %v3283_v1  ;;  %v1478_v40 = vpack.c.bf16 %v1423_v34, %v1421_v33  ;;  %v1393_v43 = vmul.f32 0.2, %v1346_v35  ;;  %v1424_v52 = vmax.f32 %v1344_v37, %v1392_v46  ;;  %v2741_v33 = vld [vmem:[#allocation8] sm:$0xff]  }
 0x320   : > { %v1349_v41 = vpop.f32.mrf.mxu0  ;;  %v1487_v34 = vsub.s32 3, %v3182_v20  ;;  %v3324_v37 = vld [vmem:[#allocation10] sm:$0xff] }
 0x321   : > { %v1394_v44 = vmul.f32 0.2, %v1348_v39  ;;  %v1350_v45 = vadd.f32 %v1349_v41, %v3280_v0  ;;  %1725 = vmatprep.mubr.bf16.mxu1 %v1478_v40  ;;  %v1425_v51 = vmax.f32 %v1346_v35, %v1393_v43  ;;  %v2742_v35 = vld [vmem:[#allocation10 + $0x8] sm:$0xff] }
 0x322   : > { %v1353_v47 = vpop.f32.mrf.mxu0  ;;  %1726 = vmatmul.mubr.bf16.gmra.mxu1 %v1477_v42  ;;  %v3322_v36 = vrot.slane %v2742_v35, %v1487_v34  ;;  %v3327_v38 = vrot.slane %v3324_v37, %v1487_v34 }
 0x323   : > { %v1395_v48 = vmul.f32 0.2, %v1350_v45  ;;  %v1426_v49 = vmax.f32 %v1348_v39, %v1394_v44  ;;  %v1354_v53 = vadd.f32 %v1353_v47, %v3283_v1 }
 0x324   : > { %v1355_v50 = vpop.f32.mrf.mxu0 }
 0x325   : > { %v1427_v21 = vmax.f32 %v1350_v45, %v1395_v48  ;;  %v1356_v25 = vadd.f32 %v1355_v50, %v3280_v0  ;;  %v1479_v56 = vpack.c.bf16 %v1426_v49, %v1424_v52  ;;  %v1396_v2 = vmul.f32 0.2, %v1354_v53 }
 0x326   : > { %v1357_v19 = vpop.f32.mrf.mxu0 }
 0x327   : > { %v1358_v54 = vadd.f32 %v1357_v19, %v3283_v1  ;;  %v1480_v24 = vpack.c.bf16 %v1427_v21, %v1425_v51  ;;  %v1397_v57 = vmul.f32 0.2, %v1356_v25  ;;  %v1428_v8 = vmax.f32 %v1354_v53, %v1396_v2 }
 0x328   : > { %v1359_v55 = vpop.f32.mrf.mxu0 }
 0x329   : > { %v1398_v58 = vmul.f32 0.2, %v1358_v54  ;;  %v1360_v63 = vadd.f32 %v1359_v55, %v3280_v0  ;;  %1735 = vmatprep.mubr.bf16.mxu1 %v1480_v24  ;;  %v1429_v6 = vmax.f32 %v1356_v25, %v1397_v57 }
 0x32a   : > { %v1363_v3 = vpop.f32.mrf.mxu0  ;;  %1736 = vmatmul.mubr.bf16.gmra.mxu1 %v1479_v56 }
 0x32b   : > { %v1399_v4 = vmul.f32 0.2, %v1360_v63  ;;  %v1430_v5 = vmax.f32 %v1358_v54, %v1398_v58  ;;  %v1364_v9 = vadd.f32 %v1363_v3, %v3283_v1 }
 0x32c   : > { %v1365_v59 = vpop.f32.mrf.mxu0 }
 0x32d   : > { %v1431_v60 = vmax.f32 %v1360_v63, %v1399_v4  ;;  %v1366_v7 = vadd.f32 %v1365_v59, %v3280_v0  ;;  %v1481_v13 = vpack.c.bf16 %v1430_v5, %v1428_v8  ;;  %v1400_v62 = vmul.f32 0.2, %v1364_v9 }
 0x32e   : > { %v1367_v10 = vpop.f32.mrf.mxu0 }
 0x32f   : > { %v1368_v11 = vadd.f32 %v1367_v10, %v3283_v1  ;;  %v1482_v12 = vpack.c.bf16 %v1431_v60, %v1429_v6  ;;  %v1401_v61 = vmul.f32 0.2, %v1366_v7  ;;  %v1432_v26 = vmax.f32 %v1364_v9, %v1400_v62  ;;  %v2735_v1 = vld [vmem:[#allocation8 + $0x18] sm:$0xff]  }
 0x330   : > { %v1369_v22 = vpop.f32.mrf.mxu0  ;;  %2385 = vmatpush3.bf16.msra.mxu0 %v2735_v1  ;;  %2452 = vmatpush3.bf16.msra.mxu1 %v2735_v1 }
 0x331   : > { %v1402_v14 = vmul.f32 0.2, %v1368_v11  ;;  %v1370_v23 = vadd.f32 %v1369_v22, %v3280_v0  ;;  %1745 = vmatprep.mubr.bf16.mxu1 %v1482_v12  ;;  %v1433_v17 = vmax.f32 %v1366_v7, %v1401_v61  ;;  %2386 = vmatprep.subr.bf16.mxu0 %v2736_v29  ;;  %v2738_v0 = vld [vmem:[#allocation8 + $0x48] sm:$0xff]  }
 0x332   : > { %1746 = vmatmul.mubr.bf16.gmra.mxu1 %v1481_v13  ;;  %2445 = vmatprep.subr.bf16.mxu1 %v2736_v29 }
 0x333   : > { %v1403_v15 = vmul.f32 0.2, %v1370_v23  ;;  %v1434_v16 = vmax.f32 %v1368_v11, %v1402_v14 }
 0x334   : > { %2387 = vmatpush3.bf16.msra.mxu0 %v2737_v30  ;;  %2453 = vmatpush3.bf16.msra.mxu1 %v2737_v30 }
 0x335   : > { %v1435_v18 = vmax.f32 %v1370_v23, %v1403_v15  ;;  %v1483_v28 = vpack.c.bf16 %v1434_v16, %v1432_v26  ;;  %2388 = vmatprep.subr.bf16.mxu0 %v2738_v0  ;;  %2446 = vmatprep.subr.bf16.mxu1 %v2738_v0 }
 0x337   : > { %v1484_v27 = vpack.c.bf16 %v1435_v18, %v1433_v17 }
 0x338   : > { %2389 = vmatpush3.bf16.msra.mxu0 %v2739_v31  ;;  %2454 = vmatpush3.bf16.msra.mxu1 %v2739_v31 }
 0x339   : > { %1755 = vmatprep.mubr.bf16.mxu1 %v1484_v27  ;;  %2390 = vmatprep.subr.bf16.mxu0 %v2740_v32 }
 0x33a   : > { %1756 = vmatmul.mubr.bf16.gmra.mxu1 %v1483_v28  ;;  %2447 = vmatprep.subr.bf16.mxu1 %v2740_v32 }
 0x33c   : > { %2391 = vmatpush3.bf16.msra.mxu0 %v2741_v33  ;;  %2455 = vmatpush3.bf16.msra.mxu1 %v2741_v33 }
 0x3c2   : > { %v1687_v39 = vpop.f32.mrf.mxu1 }
 0x3c3   : > { %v1688_v42 = vadd.f32 %v1687_v39, %v3327_v38 }
 0x3c4   : > { %v1689_v40 = vpop.f32.mrf.mxu1 }
 0x3c5   : > { %v1690_v41 = vadd.f32 %v1689_v40, %v3322_v36  ;;  %v1766_v49 = vmul.f32 0.2, %v1688_v42 }
 0x3c6   : > { %v1691_v43 = vpop.f32.mrf.mxu1 }
 0x3c7   : > { %v1692_v44 = vadd.f32 %v1691_v43, %v3327_v38  ;;  %v1767_v46 = vmul.f32 0.2, %v1690_v41  ;;  %v1798_v54 = vmax.f32 %v1688_v42, %v1766_v49 }
 0x3c8   : > { %v1693_v45 = vpop.f32.mrf.mxu1 }
 0x3c9   : > { %v1768_v47 = vmul.f32 0.2, %v1692_v44  ;;  %v1694_v48 = vadd.f32 %v1693_v45, %v3322_v36  ;;  %v1799_v52 = vmax.f32 %v1690_v41, %v1767_v46 }
 0x3ca   : > { %v1697_v50 = vpop.f32.mrf.mxu1 }
 0x3cb   : > { %v1769_v51 = vmul.f32 0.2, %v1694_v48  ;;  %v1800_v21 = vmax.f32 %v1692_v44, %v1768_v47  ;;  %v1698_v24 = vadd.f32 %v1697_v50, %v3327_v38 }
 0x3cc   : > { %v1699_v25 = vpop.f32.mrf.mxu1 }
 0x3cd   : > { %v1801_v53 = vmax.f32 %v1694_v48, %v1769_v51  ;;  %v1700_v19 = vadd.f32 %v1699_v25, %v3322_v36  ;;  %v1830_v58 = vpack.c.bf16 %v1800_v21, %v1798_v54  ;;  %v1770_v5 = vmul.f32 0.2, %v1698_v24 }
 0x3ce   : > { %v1701_v55 = vpop.f32.mrf.mxu1 }
 0x3cf   : > { %v1702_v56 = vadd.f32 %v1701_v55, %v3327_v38  ;;  %v1831_v57 = vpack.c.bf16 %v1801_v53, %v1799_v52  ;;  %v1771_v2 = vmul.f32 0.2, %v1700_v19  ;;  %v1802_v11 = vmax.f32 %v1698_v24, %v1770_v5 }
 0x3d0   : > { %v1703_v63 = vpop.f32.mrf.mxu1 }
 0x3d1   : > { %v1772_v3 = vmul.f32 0.2, %v1702_v56  ;;  %v1704_v4 = vadd.f32 %v1703_v63, %v3322_v36  ;;  %2010 = vmatprep.mubr.bf16.mxu0 %v1831_v57  ;;  %v1803_v8 = vmax.f32 %v1700_v19, %v1771_v2 }
 0x3d2   : > { %v1707_v59 = vpop.f32.mrf.mxu1  ;;  %2011 = vmatmul.mubr.bf16.vlgmr.msra.gmra.mxu0 %v1830_v58 }
 0x3d3   : > { %v1773_v6 = vmul.f32 0.2, %v1704_v4  ;;  %v1804_v60 = vmax.f32 %v1702_v56, %v1772_v3  ;;  %v1708_v12 = vadd.f32 %v1707_v59, %v3327_v38 }
 0x3d4   : > { %v1709_v7 = vpop.f32.mrf.mxu1 }
 0x3d5   : > { %v1805_v9 = vmax.f32 %v1704_v4, %v1773_v6  ;;  %v1710_v10 = vadd.f32 %v1709_v7, %v3322_v36  ;;  %v1832_v23 = vpack.c.bf16 %v1804_v60, %v1802_v11  ;;  %v1774_v17 = vmul.f32 0.2, %v1708_v12 }
 0x3d6   : > { %v1711_v22 = vpop.f32.mrf.mxu1 }
 0x3d7   : > { %v1712_v13 = vadd.f32 %v1711_v22, %v3327_v38  ;;  %v1833_v61 = vpack.c.bf16 %v1805_v9, %v1803_v8  ;;  %v1775_v62 = vmul.f32 0.2, %v1710_v10  ;;  %v1806_v0 = vmax.f32 %v1708_v12, %v1774_v17 }
 0x3d8   : > { %v1713_v14 = vpop.f32.mrf.mxu1 }
 0x3d9   : > { %v1776_v15 = vmul.f32 0.2, %v1712_v13  ;;  %v1714_v16 = vadd.f32 %v1713_v14, %v3322_v36  ;;  %2018 = vmatprep.mubr.bf16.mxu0 %v1833_v61  ;;  %v1807_v1 = vmax.f32 %v1710_v10, %v1775_v62 }
 0x3da   : > { %v1717_v18 = vpop.f32.mrf.mxu1  ;;  %2019 = vmatmul.mubr.bf16.gmra.mxu0 %v1832_v23 }
 0x3db   : > { %v1777_v26 = vmul.f32 0.2, %v1714_v16  ;;  %v1808_v27 = vmax.f32 %v1712_v13, %v1776_v15  ;;  %v1718_v31 = vadd.f32 %v1717_v18, %v3327_v38 }
 0x3dc   : > { %v1719_v28 = vpop.f32.mrf.mxu1 }
 0x3dd   : > { %v1809_v29 = vmax.f32 %v1714_v16, %v1777_v26  ;;  %v1720_v30 = vadd.f32 %v1719_v28, %v3322_v36  ;;  %v1834_v39 = vpack.c.bf16 %v1808_v27, %v1806_v0  ;;  %v1778_v43 = vmul.f32 0.2, %v1718_v31 }
 0x3de   : > { %v1721_v32 = vpop.f32.mrf.mxu1 }
 0x3df   : > { %v1722_v33 = vadd.f32 %v1721_v32, %v3327_v38  ;;  %v1835_v34 = vpack.c.bf16 %v1809_v29, %v1807_v1  ;;  %v1779_v40 = vmul.f32 0.2, %v1720_v30  ;;  %v1810_v51 = vmax.f32 %v1718_v31, %v1778_v43 }
 0x3e0   : > { %v1723_v35 = vpop.f32.mrf.mxu1 }
 0x3e1   : > { %v1780_v41 = vmul.f32 0.2, %v1722_v33  ;;  %v1724_v42 = vadd.f32 %v1723_v35, %v3322_v36  ;;  %2026 = vmatprep.mubr.bf16.mxu0 %v1835_v34  ;;  %v1811_v48 = vmax.f32 %v1720_v30, %v1779_v40 }
 0x3e2   : > { %v1727_v44 = vpop.f32.mrf.mxu1  ;;  %2027 = vmatmul.mubr.bf16.gmra.mxu0 %v1834_v39 }
 0x3e3   : > { %v1781_v45 = vmul.f32 0.2, %v1724_v42  ;;  %v1812_v46 = vmax.f32 %v1722_v33, %v1780_v41  ;;  %v1728_v21 = vadd.f32 %v1727_v44, %v3327_v38 }
 0x3e4   : > { %v1729_v47 = vpop.f32.mrf.mxu1 }
 0x3e5   : > { %v1813_v49 = vmax.f32 %v1724_v42, %v1781_v45  ;;  %v1730_v50 = vadd.f32 %v1729_v47, %v3322_v36  ;;  %v1836_v54 = vpack.c.bf16 %v1812_v46, %v1810_v51  ;;  %v1782_v57 = vmul.f32 0.2, %v1728_v21 }
 0x3e6   : > { %v1731_v25 = vpop.f32.mrf.mxu1 }
 0x3e7   : > { %v1732_v52 = vadd.f32 %v1731_v25, %v3327_v38  ;;  %v1837_v53 = vpack.c.bf16 %v1813_v49, %v1811_v48  ;;  %v1783_v24 = vmul.f32 0.2, %v1730_v50  ;;  %v1814_v6 = vmax.f32 %v1728_v21, %v1782_v57 }
 0x3e8   : > { %v1733_v19 = vpop.f32.mrf.mxu1 }
 0x3e9   : > { %v1784_v55 = vmul.f32 0.2, %v1732_v52  ;;  %v1734_v56 = vadd.f32 %v1733_v19, %v3322_v36  ;;  %2034 = vmatprep.mubr.bf16.mxu0 %v1837_v53  ;;  %v1815_v4 = vmax.f32 %v1730_v50, %v1783_v24 }
 0x3ea   : > { %v1737_v58 = vpop.f32.mrf.mxu1  ;;  %2035 = vmatmul.mubr.bf16.gmra.mxu0 %v1836_v54 }
 0x3eb   : > { %v1785_v63 = vmul.f32 0.2, %v1734_v56  ;;  %v1816_v2 = vmax.f32 %v1732_v52, %v1784_v55  ;;  %v1738_v60 = vadd.f32 %v1737_v58, %v3327_v38 }
 0x3ec   : > { %v1739_v3 = vpop.f32.mrf.mxu1 }
 0x3ed   : > { %v1817_v5 = vmax.f32 %v1734_v56, %v1785_v63  ;;  %v1740_v59 = vadd.f32 %v1739_v3, %v3322_v36  ;;  %v1838_v11 = vpack.c.bf16 %v1816_v2, %v1814_v6  ;;  %v1786_v61 = vmul.f32 0.2, %v1738_v60 }
 0x3ee   : > { %v1741_v7 = vpop.f32.mrf.mxu1 }
 0x3ef   : > { %v1742_v8 = vadd.f32 %v1741_v7, %v3327_v38  ;;  %v1839_v9 = vpack.c.bf16 %v1817_v5, %v1815_v4  ;;  %v1787_v12 = vmul.f32 0.2, %v1740_v59  ;;  %v1818_v26 = vmax.f32 %v1738_v60, %v1786_v61 }
 0x3f0   : > { %v1743_v10 = vpop.f32.mrf.mxu1 }
 0x3f1   : > { %v1788_v22 = vmul.f32 0.2, %v1742_v8  ;;  %v1744_v13 = vadd.f32 %v1743_v10, %v3322_v36  ;;  %2042 = vmatprep.mubr.bf16.mxu0 %v1839_v9  ;;  %v1819_v16 = vmax.f32 %v1740_v59, %v1787_v12 }
 0x3f2   : > { %v1747_v14 = vpop.f32.mrf.mxu1  ;;  %2043 = vmatmul.mubr.bf16.gmra.mxu0 %v1838_v11 }
 0x3f3   : > { %v1789_v23 = vmul.f32 0.2, %v1744_v13  ;;  %v1820_v62 = vmax.f32 %v1742_v8, %v1788_v22  ;;  %v1748_v27 = vadd.f32 %v1747_v14, %v3327_v38 }
 0x3f4   : > { %v1749_v15 = vpop.f32.mrf.mxu1 }
 0x3f5   : > { %v1821_v17 = vmax.f32 %v1744_v13, %v1789_v23  ;;  %v1750_v18 = vadd.f32 %v1749_v15, %v3322_v36  ;;  %v1840_v0 = vpack.c.bf16 %v1820_v62, %v1818_v26  ;;  %v1790_v34 = vmul.f32 0.2, %v1748_v27 }
 0x3f6   : > { %v1751_v28 = vpop.f32.mrf.mxu1 }
 0x3f7   : > { %v1752_v1 = vadd.f32 %v1751_v28, %v3327_v38  ;;  %v1841_v29 = vpack.c.bf16 %v1821_v17, %v1819_v16  ;;  %v1791_v31 = vmul.f32 0.2, %v1750_v18  ;;  %v1822_v45 = vmax.f32 %v1748_v27, %v1790_v34 }
 0x3f8   : > { %v1753_v30 = vpop.f32.mrf.mxu1 }
 0x3f9   : > { %v1792_v32 = vmul.f32 0.2, %v1752_v1  ;;  %v1754_v33 = vadd.f32 %v1753_v30, %v3322_v36  ;;  %2050 = vmatprep.mubr.bf16.mxu0 %v1841_v29  ;;  %v1823_v42 = vmax.f32 %v1750_v18, %v1791_v31 }
 0x3fa   : > { %v1757_v35 = vpop.f32.mrf.mxu1  ;;  %2051 = vmatmul.mubr.bf16.gmra.mxu0 %v1840_v0 }
 0x3fb   : > { %v1793_v39 = vmul.f32 0.2, %v1754_v33  ;;  %v1824_v40 = vmax.f32 %v1752_v1, %v1792_v32  ;;  %v1758_v46 = vadd.f32 %v1757_v35, %v3327_v38 }
 0x3fc   : > { %v1759_v41 = vpop.f32.mrf.mxu1 }
 0x3fd   : > { %v1825_v43 = vmax.f32 %v1754_v33, %v1793_v39  ;;  %v1760_v44 = vadd.f32 %v1759_v41, %v3322_v36  ;;  %v1842_v50 = vpack.c.bf16 %v1824_v40, %v1822_v45  ;;  %v1794_v53 = vmul.f32 0.2, %v1758_v46 }
 0x3fe   : > { %v1761_v47 = vpop.f32.mrf.mxu1 }
 0x3ff   : > { %v1762_v48 = vadd.f32 %v1761_v47, %v3327_v38  ;;  %v1843_v49 = vpack.c.bf16 %v1825_v43, %v1823_v42  ;;  %v1795_v21 = vmul.f32 0.2, %v1760_v44  ;;  %v1826_v56 = vmax.f32 %v1758_v46, %v1794_v53 }
 0x400   : > { %v1763_v51 = vpop.f32.mrf.mxu1  ;;  %v1880_v38 = vsub.s32 4, %v3182_v20 }
 0x401   : > { %v1796_v25 = vmul.f32 0.2, %v1762_v48  ;;  %v1764_v52 = vadd.f32 %v1763_v51, %v3322_v36  ;;  %2058 = vmatprep.mubr.bf16.mxu1 %v1843_v49  ;;  %v1827_v24 = vmax.f32 %v1760_v44, %v1795_v21 }
 0x402   : > { %2059 = vmatmul.mubr.bf16.vlgmr.msra.gmra.mxu1 %v1842_v50  ;;  %v3364_v2 = vrot.slane %v3324_v37, %v1880_v38 }
 0x403   : > { %v1797_v19 = vmul.f32 0.2, %v1764_v52  ;;  %v1828_v54 = vmax.f32 %v1762_v48, %v1796_v25 }
 0x405   : > { %v1829_v55 = vmax.f32 %v1764_v52, %v1797_v19  ;;  %v1844_v58 = vpack.c.bf16 %v1828_v54, %v1826_v56 }
 0x407   : > { %v1845_v57 = vpack.c.bf16 %v1829_v55, %v1827_v24 }
 0x409   : > { %2066 = vmatprep.mubr.bf16.mxu1 %v1845_v57 }
 0x40a   : > { %2067 = vmatmul.mubr.bf16.gmra.mxu1 %v1844_v58 }
 0x492   : > { %v2392_v63 = vpop.f32.mrf.mxu0 }
 0x494   : > { %v2393_v36 = vpop.f32.mrf.mxu0 }
 0x495   : > { %v2394_v3 = vadd.f32 %v2393_v36, %v2392_v63 }
 0x496   : > { %v2395_v4 = vpop.f32.mrf.mxu0 }
 0x497   : > { %v2013_v5 = vadd.f32 %v2394_v3, %v3364_v2 }
 0x498   : > { %v2396_v59 = vpop.f32.mrf.mxu0 }
 0x499   : > { %2075 = vst [vmem:[%s3367_s26] sm:$0xff] %v2013_v5  ;;  %v2397_v6 = vadd.f32 %v2396_v59, %v2395_v4 }
 0x49a   : > { %v2398_v20 = vpop.f32.mrf.mxu0 }
 0x49b   : > { %v2016_v60 = vadd.f32 %v2397_v6, %v3364_v2 }
 0x49c   : > { %v2399_v7 = vpop.f32.mrf.mxu0 }
 0x49d   : > { %2076 = vst [vmem:[%s3367_s26 + $0x8] sm:$0xff] %v2016_v60  ;;  %v2400_v37 = vadd.f32 %v2399_v7, %v2398_v20 }
 0x49e   : > { %v2401_v8 = vpop.f32.mrf.mxu0 }
 0x49f   : > { %v2021_v9 = vadd.f32 %v2400_v37, %v3364_v2 }
 0x4a0   : > { %v2402_v10 = vpop.f32.mrf.mxu0 }
 0x4a1   : > { %2077 = vst [vmem:[%s3367_s26 + $0x10] sm:$0xff] %v2021_v9  ;;  %v2403_v11 = vadd.f32 %v2402_v10, %v2401_v8 }
 0x4a2   : > { %v2404_v12 = vpop.f32.mrf.mxu0 }
 0x4a3   : > { %v2024_v22 = vadd.f32 %v2403_v11, %v3364_v2 }
 0x4a4   : > { %v2405_v13 = vpop.f32.mrf.mxu0 }
 0x4a5   : > { %2078 = vst [vmem:[%s3367_s26 + $0x18] sm:$0xff] %v2024_v22  ;;  %v2406_v61 = vadd.f32 %v2405_v13, %v2404_v12 }
 0x4a6   : > { %v2407_v14 = vpop.f32.mrf.mxu0 }
 0x4a7   : > { %v2029_v23 = vadd.f32 %v2406_v61, %v3364_v2 }
 0x4a8   : > { %v2408_v62 = vpop.f32.mrf.mxu0 }
 0x4a9   : > { %2079 = vst [vmem:[%s3367_s26 + $0x20] sm:$0xff] %v2029_v23  ;;  %v2409_v15 = vadd.f32 %v2408_v62, %v2407_v14 }
 0x4aa   : > { %v2410_v16 = vpop.f32.mrf.mxu0 }
 0x4ab   : > { %v2032_v17 = vadd.f32 %v2409_v15, %v3364_v2 }
 0x4ac   : > { %v2411_v18 = vpop.f32.mrf.mxu0 }
 0x4ad   : > { %2080 = vst [vmem:[%s3367_s26 + $0x28] sm:$0xff] %v2032_v17  ;;  %v2412_v26 = vadd.f32 %v2411_v18, %v2410_v16 }
 0x4ae   : > { %v2413_v27 = vpop.f32.mrf.mxu0 }
 0x4af   : > { %v2037_v28 = vadd.f32 %v2412_v26, %v3364_v2 }
 0x4b0   : > { %v2414_v1 = vpop.f32.mrf.mxu0 }
 0x4b1   : > { %2081 = vst [vmem:[%s3367_s26 + $0x30] sm:$0xff] %v2037_v28  ;;  %v2415_v29 = vadd.f32 %v2414_v1, %v2413_v27 }
 0x4b2   : > { %v2416_v30 = vpop.f32.mrf.mxu0 }
 0x4b3   : > { %v2040_v0 = vadd.f32 %v2415_v29, %v3364_v2 }
 0x4b4   : > { %v2417_v31 = vpop.f32.mrf.mxu0 }
 0x4b5   : > { %2082 = vst [vmem:[%s3367_s26 + $0x38] sm:$0xff] %v2040_v0  ;;  %v2418_v32 = vadd.f32 %v2417_v31, %v2416_v30 }
 0x4b6   : > { %v2419_v33 = vpop.f32.mrf.mxu0 }
 0x4b7   : > { %v2045_v34 = vadd.f32 %v2418_v32, %v3364_v2 }
 0x4b8   : > { %v2420_v35 = vpop.f32.mrf.mxu0 }
 0x4b9   : > { %2083 = vst [vmem:[%s3367_s26 + $0x40] sm:$0xff] %v2045_v34  ;;  %v2421_v39 = vadd.f32 %v2420_v35, %v2419_v33 }
 0x4ba   : > { %v2422_v40 = vpop.f32.mrf.mxu0 }
 0x4bb   : > { %v2048_v41 = vadd.f32 %v2421_v39, %v3364_v2 }
 0x4bc   : > { %v2423_v42 = vpop.f32.mrf.mxu0 }
 0x4bd   : > { %2084 = vst [vmem:[%s3367_s26 + $0x48] sm:$0xff] %v2048_v41  ;;  %v2424_v43 = vadd.f32 %v2423_v42, %v2422_v40 }
 0x4be   : > { %v2425_v44 = vpop.f32.mrf.mxu0 }
 0x4bf   : > { %v2053_v45 = vadd.f32 %v2424_v43, %v3364_v2 }
 0x4c0   : > { %v2426_v46 = vpop.f32.mrf.mxu0 }
 0x4c1   : > { %2085 = vst [vmem:[%s3367_s26 + $0x50] sm:$0xff] %v2053_v45  ;;  %v2427_v47 = vadd.f32 %v2426_v46, %v2425_v44 }
 0x4c2   : > { %v2428_v48 = vpop.f32.mrf.mxu1 }
 0x4c3   : > { %v2056_v49 = vadd.f32 %v2427_v47, %v3364_v2 }
 0x4c4   : > { %v2429_v50 = vpop.f32.mrf.mxu1 }
 0x4c5   : > { %2086 = vst [vmem:[%s3367_s26 + $0x58] sm:$0xff] %v2056_v49  ;;  %v2430_v51 = vadd.f32 %v2429_v50, %v2428_v48 }
 0x4c6   : > { %v2431_v21 = vpop.f32.mrf.mxu1 }
 0x4c7   : > { %v2061_v25 = vadd.f32 %v2430_v51, %v3364_v2 }
 0x4c8   : > { %v2432_v52 = vpop.f32.mrf.mxu1 }
 0x4c9   : > { %2087 = vst [vmem:[%s3367_s26 + $0x60] sm:$0xff] %v2061_v25  ;;  %v2433_v53 = vadd.f32 %v2432_v52, %v2431_v21 }
 0x4ca   : > { %v2434_v19 = vpop.f32.mrf.mxu1 }
 0x4cb   : > { %v2064_v54 = vadd.f32 %v2433_v53, %v3364_v2 }
 0x4cc   : > { %v2435_v24 = vpop.f32.mrf.mxu1 }
 0x4cd   : > { %2088 = vst [vmem:[%s3367_s26 + $0x68] sm:$0xff] %v2064_v54  ;;  %v2436_v55 = vadd.f32 %v2435_v24, %v2434_v19 }
 0x4ce   : > { %v2437_v56 = vpop.f32.mrf.mxu1 }
 0x4cf   : > { %v2069_v57 = vadd.f32 %v2436_v55, %v3364_v2 }
 0x4d0   : > { %v2438_v58 = vpop.f32.mrf.mxu1 }
 0x4d1   : > { %2089 = vst [vmem:[%s3367_s26 + $0x70] sm:$0xff] %v2069_v57  ;;  %v2439_v38 = vadd.f32 %v2438_v58, %v2437_v56 }
 0x4d3   : > { %v2072_v63 = vadd.f32 %v2439_v38, %v3364_v2 }
 0x4d5   : > { %2090 = vst [vmem:[%s3367_s26 + $0x78] sm:$0xff] %v2072_v63 }
 0x4d6   : > { %2889 = shalt.err (!%p2886_p3)
}
 0x4d7   : > { %s2890_s9 = scalar_lea.hbm %s3403_s12, 2048  ;;  %s2894_s28 = scalar_lea.hbm %s3455_s5, 4096 }
 0x4d8   : > { %p2891_p6 = scmp.ne.s32.totalorder %s3403_s12, %s2890_s9  ;;  %p2895_p13 = scmp.lt.s32.totalorder %s3403_s12, %s3455_s5 }
 0x4d9   : > { %p2896_p11 = scmp.lt.s32.totalorder %s2894_s28, %s2890_s9 }
 0x4da   : > { %p2892_p4 = pnand %p2891_p6, %p3475_p2 }
 0x4db   : > { %p2897_p5 = por %p2896_p11, %p2895_p13 }
 0x4dc   : > { %p2893_p8 = pneg %p2892_p4 }
 0x4de   : > { %p2898_p1 = pnand %p2897_p5, %p2893_p8 }
 0x4e0   : > { %2901 = shalt.err (!%p2898_p1)
}
 0x4e1   : > { %s2961_s14 = smov 128   ;;  %s2962_s10 = smov 8  }
 0x4e2   : > { %2474 = dma.vmem_to_hbm [thread:$0]  (%p3475_p2), %s3405_s6, 2048, %s3403_s12, %s2092_s30, %s2961_s14, %s2961_s14, %s2962_s10  }
 0x4e3 PF: > { %s2120_s11 = sand.u32 1, %s2936_s18   ;;  %p3476_p12 = scmp.ne.s32.totalorder %s3462_s25, 0 }
 0x4e4   : > { %p3477_p7 = scmp.ge.s32.totalorder %s2948_s21, 2  ;;  %s2121_s17 = scalar_lea.sflag [#allocation4], %s2120_s11 }
 0x4e6   : > { %p2494_p9 = pnand %p3477_p7, %p3476_p12 }
 0x4e8   : > { %p2495_p0 = pneg %p2494_p9 }
 0x4ea   : > { %2931 = dma.done.wait (%p2495_p0), %s2121_s17, 2048  }
 0x4eb   : > { %2933 = vsyncadd (%p2495_p0), %s2121_s17, 4294965248  ;;  %p20_p10 = scmp.ge.s32.totalorder %s3090_s8, 4   ;;  %s3478_s18 = smov %s2940_s19 }
 0x4ec   : > { %s3479_s19 = smov %s2944_s20  ;;  %s3480_s20 = smov %s3099_s15 }
 0x4ed   : > { %s3481_s21 = smov %s3090_s8  ;;  %22 = sbr.rel (!%p20_p10) target bundleno = 7 (0x7), region = 103 }
 0x4f2   :  { %2126 = vsyncpa [#allocation3], 1 }
 0x4f3   :  { %2128 = vsyncpa [#allocation3 + $0x1], 1 }
 0x4f4   :  { %2129 = vsyncpa [#allocation6], 1 }
 0x4f5   :  { %2130 = vsyncpa [#allocation9], 1 }
 0x4f6   :  { %2131 = vsyncpa [#allocation4], 1 }
 0x4f7   :  { %2133 = vsyncpa [#allocation4 + $0x1], 1 }

</bundles_post_ra>
